<compile_context>
chip_gen: v5e
topology: v5e:2x2
jax: 0.10.0
libtpu: 0.0.40
codegen_flags: <defaults>
</compile_context>

<pallas_src>
import functools

import jax
import jax.numpy as jnp
from jax.experimental import pallas as pl
from jax.experimental.pallas import tpu as pltpu


def _sat_kernel(*refs, num_stu, inv_T, T2_over_K, inv_D, loss_eff, feat_coef,
                inv_bsz):
    w_ref, tf_ref, tl_ref, sl_ref = refs[:4]
    sf_refs = refs[4:4 + num_stu]
    out_ref = refs[4 + num_stu]

    eps2 = 1e-24
    f32 = jnp.float32

    # ---- teacher-side work: computed once per batch tile ----
    t = tf_ref[...].astype(f32)                                    # (TB, D)
    ones_d = jnp.ones((t.shape[-1], 1), f32)                       # MXU reduce helper

    # row sum-of-squares on the (otherwise idle) MXU
    t_sq = jnp.dot(t * t, ones_d, preferred_element_type=f32)      # (TB, 1)
    t_n = t * jax.lax.rsqrt(jnp.maximum(t_sq, eps2))               # (TB, D)

    lt = tl_ref[...].astype(f32) * inv_T                           # (TB, K)
    lt = lt - jnp.max(lt, axis=-1, keepdims=True)
    e_t = jnp.exp(lt)                                              # single exp
    z_t = jnp.sum(e_t, axis=-1, keepdims=True)
    log_p_t = lt - jnp.log(z_t)
    p_t = e_t * (1.0 / z_t)                                        # (TB, K)
    # student-invariant part of the KD term, hoisted out of the loop
    ce_t = jnp.sum(p_t * log_p_t, axis=-1, keepdims=True)          # (TB, 1)

    acc_kd = jnp.zeros((1, 1), f32)
    acc_fl = jnp.zeros((1, 1), f32)

    # ---- static loop over students ----
    for i in range(num_stu):
        w = w_ref[i].astype(f32)                                   # (TB, 1)

        # FT loss: mean over D of |normalize(s) - normalize(t)|
        s = sf_refs[i][...].astype(f32)                            # (TB, D)
        s_sq = jnp.dot(s * s, ones_d, preferred_element_type=f32)  # (TB, 1) MXU
        s_n = s * jax.lax.rsqrt(jnp.maximum(s_sq, eps2))
        fl = jnp.dot(jnp.abs(s_n - t_n), ones_d,
                     preferred_element_type=f32) * inv_D           # (TB, 1) MXU

        # KD loss: T^2 * mean over K of p_t * (log p_t - log p_s)
        ls = sl_ref[i].astype(f32) * inv_T                         # (TB, K)
        ls = ls - jnp.max(ls, axis=-1, keepdims=True)
        log_p_s = ls - jnp.log(jnp.sum(jnp.exp(ls), axis=-1, keepdims=True))
        cross = jnp.sum(p_t * log_p_s, axis=-1, keepdims=True)     # (TB, 1)
        kd = (ce_t - cross) * T2_over_K

        # fused weighted reduction -> scalars (no (bsz,1) accumulators)
        acc_kd = acc_kd + jnp.sum(w * kd, keepdims=True)           # (1, 1)
        acc_fl = acc_fl + jnp.sum(w * fl, keepdims=True)           # (1, 1)

    total = (loss_eff * acc_kd + feat_coef * acc_fl) * inv_bsz     # (1, 1)
    out_ref[0] = jnp.broadcast_to(total, (1, 128))                 # lane-dense


def _vmem_capacity_bytes():
    try:
        return int(pltpu.get_tpu_info().vmem_capacity_bytes)
    except Exception:
        return 64 << 20      # conservative fallback (v7x per-TC VMEM)


def _choose_batch_tile(padded_bsz, est_fn, budget_bytes, min_tiles):
    """Largest batch tile (multiple of 8 dividing padded_bsz) whose working set
    fits the budget, preferring >= min_tiles grid steps and an even step count
    (v7x megacore)."""
    cands = [tb for tb in range(8, padded_bsz + 1, 8) if padded_bsz % tb == 0]
    if not cands:
        return padded_bsz
    fit = [tb for tb in cands if est_fn(tb) <= budget_bytes]
    preds = (
        lambda tb: padded_bsz // tb >= min_tiles and (padded_bsz // tb) % 2 == 0,
        lambda tb: padded_bsz // tb >= min_tiles,
        lambda tb: padded_bsz // tb >= 2 and (padded_bsz // tb) % 2 == 0,
        lambda tb: True,
    )
    for pred in preds:
        good = [tb for tb in fit if pred(tb)]
        if good:
            return max(good)
    return min(cands)          # nothing fits the budget: smallest legal tile


def self_attention_loss(s_value, f_target, outputs, weight, *,
                        loss_efficient=1.0, feature_loss_coefficient=0.03,
                        T=3.0):
    """s_value: list[num_stu] of (bsz,C,H,W); f_target: (bsz,C,H,W);
       outputs: list[num_stu+1] of (bsz,K) logits (outputs[0] = teacher);
       weight: (bsz, num_stu)."""
    bsz, num_stu = weight.shape

    # Keep native dtype (upcast to f32 only inside the kernel); reshapes of
    # contiguous NCHW are free.
    s_feats = [v.reshape(bsz, -1) for v in s_value]                # (bsz, D)
    t_feat = f_target.reshape(bsz, -1)                             # (bsz, D)
    t_log = outputs[0]                                             # (bsz, K)
    s_log = jnp.stack(outputs[1:], axis=0)                         # (num_stu,bsz,K)
    w_r = jnp.transpose(weight)[:, :, None]                        # (num_stu,bsz,1)

    D = t_feat.shape[-1]
    K = t_log.shape[-1]

    # Zero-pad the batch to a multiple of 8 (padded rows carry zero weight).
    pad = (-bsz) % 8
    if pad:
        s_feats = [jnp.pad(x, ((0, pad), (0, 0))) for x in s_feats]
        t_feat = jnp.pad(t_feat, ((0, pad), (0, 0)))
        t_log = jnp.pad(t_log, ((0, pad), (0, 0)))
        s_log = jnp.pad(s_log, ((0, 0), (0, pad), (0, 0)))
        w_r = jnp.pad(w_r, ((0, 0), (0, pad), (0, 0)))
    pbsz = bsz + pad

    feat_is = jnp.dtype(t_feat.dtype).itemsize
    log_is = jnp.dtype(t_log.dtype).itemsize
    w_is = jnp.dtype(w_r.dtype).itemsize

    def est_bytes(tb):
        # double-buffered native-dtype input tiles + in-kernel f32 temporaries
        ins = 2 * tb * ((num_stu + 1) * (D * feat_is + K * log_is)
                        + num_stu * w_is)
        tmp = tb * 6 * (D + K) * 4
        return ins + tmp + (1 << 20)

    vmem_cap = _vmem_capacity_bytes()
    budget = max(8 << 20, min(vmem_cap // 2, 48 << 20))
    min_tiles = max(1, min(4, pbsz // 8))
    TB = _choose_batch_tile(pbsz, est_bytes, budget, min_tiles)
    n_btiles = pbsz // TB

    vmem_limit = int(max(16 << 20,
                         min(max(32 << 20, est_bytes(TB) + (8 << 20)),
                             (vmem_cap * 3) // 4)))

    kernel = functools.partial(
        _sat_kernel,
        num_stu=num_stu,
        inv_T=float(1.0 / T),
        T2_over_K=float(T * T / K),
        inv_D=float(1.0 / D),
        loss_eff=float(loss_efficient),
        feat_coef=float(feature_loss_coefficient),
        inv_bsz=float(1.0 / bsz),
    )

    in_specs = [
        pl.BlockSpec((num_stu, TB, 1), lambda b: (0, b, 0)),       # weight^T
        pl.BlockSpec((TB, D), lambda b: (b, 0)),                   # teacher feat
        pl.BlockSpec((TB, K), lambda b: (b, 0)),                   # teacher logits
        pl.BlockSpec((num_stu, TB, K), lambda b: (0, b, 0)),       # student logits
    ]
    in_specs += [pl.BlockSpec((TB, D), lambda b: (b, 0))
                 for _ in range(num_stu)]                          # student feats

    out = pl.pallas_call(
        kernel,
        out_shape=jax.ShapeDtypeStruct((n_btiles, 1, 128), jnp.float32),
        grid_spec=pltpu.PrefetchScalarGridSpec(
            num_scalar_prefetch=0,
            grid=(n_btiles,),
            in_specs=in_specs,
            out_specs=pl.BlockSpec((1, 1, 128), lambda b: (b, 0, 0)),
        ),
        compiler_params=pltpu.CompilerParams(
            dimension_semantics=("parallel",),
            vmem_limit_bytes=vmem_limit),
    )(w_r, t_feat, t_log, s_log, *s_feats)

    # tiny cross-tile reduction (partial per-tile losses) in plain JAX
    return jnp.sum(out[:, 0, 0])


def reference_loss(s_value, f_target, outputs, weight, *,
                   loss_efficient=1.0, feature_loss_coefficient=0.03, T=3.0):
    bsz, num_stu = weight.shape
    t = f_target.reshape(bsz, -1).astype(jnp.float32)
    t_n = t / jnp.maximum(jnp.linalg.norm(t, axis=-1, keepdims=True), 1e-12)
    log_p_t = jax.nn.log_softmax(outputs[0].astype(jnp.float32) / T, axis=-1)
    p_t = jnp.exp(log_p_t)
    ind_fl, ind_kd = [], []
    for i in range(num_stu):
        s = s_value[i].reshape(bsz, -1).astype(jnp.float32)
        s_n = s / jnp.maximum(jnp.linalg.norm(s, axis=-1, keepdims=True), 1e-12)
        ind_fl.append(jnp.mean(jnp.abs(s_n - t_n), axis=-1))
        log_p_s = jax.nn.log_softmax(outputs[1 + i].astype(jnp.float32) / T,
                                     axis=-1)
        ind_kd.append(jnp.mean(p_t * (log_p_t - log_p_s), axis=-1) * T * T)
    ind_fl = jnp.stack(ind_fl, axis=1)
    ind_kd = jnp.stack(ind_kd, axis=1)
    loss_kd = jnp.sum(weight * ind_kd) / bsz
    loss_fl = jnp.sum(weight * ind_fl) / bsz
    return loss_efficient * loss_kd + feature_loss_coefficient * loss_fl


def _make_inputs(key, bsz, num_stu, C, H, W, K):
    keys = jax.random.split(key, 2 * num_stu + 3)
    s_value = [jax.random.normal(keys[i], (bsz, C, H, W), jnp.float32)
               for i in range(num_stu)]
    f_target = jax.random.normal(keys[num_stu], (bsz, C, H, W), jnp.float32)
    outputs = [jax.random.normal(keys[num_stu + 1 + i], (bsz, K), jnp.float32)
               for i in range(num_stu + 1)]      # outputs[0] = teacher
    weight = jax.nn.softmax(
        jax.random.normal(keys[-1], (bsz, num_stu), jnp.float32), axis=-1)
    return s_value, f_target, outputs, weight


if __name__ == "__main__":
    cfg = dict(loss_efficient=1.0, feature_loss_coefficient=0.03, T=3.0)
    num_stu, C, H, W, K = 3, 4, 16, 16, 128
    root = jax.random.PRNGKey(0)

    # bsz=32 exercises the multi-tile pipelined path; bsz=12 the batch padding.
    for case, bsz in enumerate((32, 12)):
        s_value, f_target, outputs, weight = _make_inputs(
            jax.random.fold_in(root, case), bsz, num_stu, C, H, W, K)

        loss = self_attention_loss(s_value, f_target, outputs, weight, **cfg)
        loss = jax.block_until_ready(loss)

        ref = reference_loss(s_value, f_target, outputs, weight, **cfg)
        ref = jax.block_until_ready(ref)

        assert jnp.allclose(loss, ref, rtol=1e-4, atol=1e-5), (bsz, loss, ref)

    print("KERNEL_OK")
</pallas_src>

<mosaic_0001>
module attributes {stable_mosaic.version = 11 : i64} {
  func.func @_sat_kernel(%arg0: i32, %arg1: memref<3x8x1xf32, #tpu.memory_space<vmem>>, %arg2: memref<8x1024xf32, #tpu.memory_space<vmem>>, %arg3: memref<8x128xf32, #tpu.memory_space<vmem>>, %arg4: memref<3x8x128xf32, #tpu.memory_space<vmem>>, %arg5: memref<8x1024xf32, #tpu.memory_space<vmem>>, %arg6: memref<8x1024xf32, #tpu.memory_space<vmem>>, %arg7: memref<8x1024xf32, #tpu.memory_space<vmem>>, %arg8: memref<1x1x128xf32, #tpu.memory_space<vmem>>) attributes {dimension_semantics = [#tpu.dimension_semantics<parallel>], iteration_bounds = array<i64: 4>, scalar_prefetch = 0 : i64, scratch_operands = 0 : i64, tpu.core_type = #tpu.core_type<tc>, window_params = [{transform_indices = @transform_0, window_bounds = array<i64: 3, 8, 1>}, {transform_indices = @transform_1, window_bounds = array<i64: 8, 1024>}, {transform_indices = @transform_2, window_bounds = array<i64: 8, 128>}, {transform_indices = @transform_3, window_bounds = array<i64: 3, 8, 128>}, {transform_indices = @transform_4, window_bounds = array<i64: 8, 1024>}, {transform_indices = @transform_5, window_bounds = array<i64: 8, 1024>}, {transform_indices = @transform_6, window_bounds = array<i64: 8, 1024>}, {transform_indices = @transform_7, window_bounds = array<i64: 1, 1, 128>}]} {
    %c0 = arith.constant 0 : index
    %c0_0 = arith.constant 0 : index
    %0 = vector.load %arg2[%c0, %c0_0] : memref<8x1024xf32, #tpu.memory_space<vmem>>, vector<8x1024xf32>
    %cst = arith.constant 1.000000e+00 : f32
    %1 = vector.broadcast %cst : f32 to vector<1024x1xf32>
    %2 = arith.mulf %0, %0 : vector<8x1024xf32>
    %cst_1 = arith.constant dense<0.000000e+00> : vector<8x1xf32>
    %3 = tpu.matmul %2, %1, %cst_1 {dimension_numbers = #tpu.dot_dimension_numbers<[1], [0], [0], [1], [0, 0, 1, 1], [], []>} : vector<8x1024xf32>, vector<1024x1xf32>, vector<8x1xf32> -> vector<8x1xf32>
    %cst_2 = arith.constant 1.000000e-24 : f32
    %4 = vector.broadcast %cst_2 : f32 to vector<8x1xf32>
    %5 = arith.maximumf %3, %4 : vector<8x1xf32>
    %6 = math.rsqrt %5 : vector<8x1xf32>
    %7 = vector.broadcast %6 : vector<8x1xf32> to vector<8x1024xf32>
    %8 = arith.mulf %0, %7 : vector<8x1024xf32>
    %c0_3 = arith.constant 0 : index
    %c0_4 = arith.constant 0 : index
    %9 = vector.load %arg3[%c0_3, %c0_4] : memref<8x128xf32, #tpu.memory_space<vmem>>, vector<8x128xf32>
    %cst_5 = arith.constant 0.333333343 : f32
    %10 = vector.broadcast %cst_5 : f32 to vector<8x128xf32>
    %11 = arith.mulf %9, %10 : vector<8x128xf32>
    %cst_6 = arith.constant dense<0xFF800000> : vector<8xf32>
    %12 = vector.multi_reduction <maximumf>, %11, %cst_6 [1] : vector<8x128xf32> to vector<8xf32>
    %13 = vector.shape_cast %12 : vector<8xf32> to vector<8x1xf32>
    %14 = vector.broadcast %13 : vector<8x1xf32> to vector<8x128xf32>
    %15 = arith.subf %11, %14 : vector<8x128xf32>
    %16 = math.exp %15 : vector<8x128xf32>
    %cst_7 = arith.constant dense<0.000000e+00> : vector<8xf32>
    %17 = vector.multi_reduction <add>, %16, %cst_7 [1] : vector<8x128xf32> to vector<8xf32>
    %18 = vector.shape_cast %17 : vector<8xf32> to vector<8x1xf32>
    %19 = math.log %18 : vector<8x1xf32>
    %20 = vector.broadcast %19 : vector<8x1xf32> to vector<8x128xf32>
    %21 = arith.subf %15, %20 : vector<8x128xf32>
    %cst_8 = arith.constant 1.000000e+00 : f32
    %22 = vector.broadcast %cst_8 : f32 to vector<8x1xf32>
    %23 = arith.divf %22, %18 : vector<8x1xf32>
    %24 = vector.broadcast %23 : vector<8x1xf32> to vector<8x128xf32>
    %25 = arith.mulf %16, %24 : vector<8x128xf32>
    %26 = arith.mulf %25, %21 : vector<8x128xf32>
    %cst_9 = arith.constant dense<0.000000e+00> : vector<8xf32>
    %27 = vector.multi_reduction <add>, %26, %cst_9 [1] : vector<8x128xf32> to vector<8xf32>
    %28 = vector.shape_cast %27 : vector<8xf32> to vector<8x1xf32>
    %cst_10 = arith.constant 0.000000e+00 : f32
    %29 = vector.broadcast %cst_10 : f32 to vector<1x1xf32>
    %cst_11 = arith.constant 0.000000e+00 : f32
    %30 = vector.broadcast %cst_11 : f32 to vector<1x1xf32>
    %c0_12 = arith.constant 0 : index
    %c0_13 = arith.constant 0 : index
    %c0_14 = arith.constant 0 : index
    %31 = vector.load %arg1[%c0_12, %c0_13, %c0_14] : memref<3x8x1xf32, #tpu.memory_space<vmem>>, vector<1x8x1xf32>
    %32 = vector.shape_cast %31 : vector<1x8x1xf32> to vector<8x1xf32>
    %c0_15 = arith.constant 0 : index
    %c0_16 = arith.constant 0 : index
    %33 = vector.load %arg5[%c0_15, %c0_16] : memref<8x1024xf32, #tpu.memory_space<vmem>>, vector<8x1024xf32>
    %34 = arith.mulf %33, %33 : vector<8x1024xf32>
    %cst_17 = arith.constant dense<0.000000e+00> : vector<8x1xf32>
    %35 = tpu.matmul %34, %1, %cst_17 {dimension_numbers = #tpu.dot_dimension_numbers<[1], [0], [0], [1], [0, 0, 1, 1], [], []>} : vector<8x1024xf32>, vector<1024x1xf32>, vector<8x1xf32> -> vector<8x1xf32>
    %cst_18 = arith.constant 1.000000e-24 : f32
    %36 = vector.broadcast %cst_18 : f32 to vector<8x1xf32>
    %37 = arith.maximumf %35, %36 : vector<8x1xf32>
    %38 = math.rsqrt %37 : vector<8x1xf32>
    %39 = vector.broadcast %38 : vector<8x1xf32> to vector<8x1024xf32>
    %40 = arith.mulf %33, %39 : vector<8x1024xf32>
    %41 = arith.subf %40, %8 : vector<8x1024xf32>
    %42 = math.absf %41 : vector<8x1024xf32>
    %cst_19 = arith.constant dense<0.000000e+00> : vector<8x1xf32>
    %43 = tpu.matmul %42, %1, %cst_19 {dimension_numbers = #tpu.dot_dimension_numbers<[1], [0], [0], [1], [0, 0, 1, 1], [], []>} : vector<8x1024xf32>, vector<1024x1xf32>, vector<8x1xf32> -> vector<8x1xf32>
    %cst_20 = arith.constant 9.765625E-4 : f32
    %44 = vector.broadcast %cst_20 : f32 to vector<8x1xf32>
    %45 = arith.mulf %43, %44 : vector<8x1xf32>
    %c0_21 = arith.constant 0 : index
    %c0_22 = arith.constant 0 : index
    %c0_23 = arith.constant 0 : index
    %46 = vector.load %arg4[%c0_21, %c0_22, %c0_23] : memref<3x8x128xf32, #tpu.memory_space<vmem>>, vector<1x8x128xf32>
    %47 = vector.shape_cast %46 : vector<1x8x128xf32> to vector<8x128xf32>
    %cst_24 = arith.constant 0.333333343 : f32
    %48 = vector.broadcast %cst_24 : f32 to vector<8x128xf32>
    %49 = arith.mulf %47, %48 : vector<8x128xf32>
    %cst_25 = arith.constant dense<0xFF800000> : vector<8xf32>
    %50 = vector.multi_reduction <maximumf>, %49, %cst_25 [1] : vector<8x128xf32> to vector<8xf32>
    %51 = vector.shape_cast %50 : vector<8xf32> to vector<8x1xf32>
    %52 = vector.broadcast %51 : vector<8x1xf32> to vector<8x128xf32>
    %53 = arith.subf %49, %52 : vector<8x128xf32>
    %54 = math.exp %53 : vector<8x128xf32>
    %cst_26 = arith.constant dense<0.000000e+00> : vector<8xf32>
    %55 = vector.multi_reduction <add>, %54, %cst_26 [1] : vector<8x128xf32> to vector<8xf32>
    %56 = vector.shape_cast %55 : vector<8xf32> to vector<8x1xf32>
    %57 = math.log %56 : vector<8x1xf32>
    %58 = vector.broadcast %57 : vector<8x1xf32> to vector<8x128xf32>
    %59 = arith.subf %53, %58 : vector<8x128xf32>
    %60 = arith.mulf %25, %59 : vector<8x128xf32>
    %cst_27 = arith.constant dense<0.000000e+00> : vector<8xf32>
    %61 = vector.multi_reduction <add>, %60, %cst_27 [1] : vector<8x128xf32> to vector<8xf32>
    %62 = vector.shape_cast %61 : vector<8xf32> to vector<8x1xf32>
    %63 = arith.subf %28, %62 : vector<8x1xf32>
    %cst_28 = arith.constant 7.031250e-02 : f32
    %64 = vector.broadcast %cst_28 : f32 to vector<8x1xf32>
    %65 = arith.mulf %63, %64 : vector<8x1xf32>
    %66 = arith.mulf %32, %65 : vector<8x1xf32>
    %67 = vector.shape_cast %66 : vector<8x1xf32> to vector<1x8x1xf32>
    %cst_29 = arith.constant dense<0.000000e+00> : vector<1xf32>
    %68 = vector.multi_reduction <add>, %67, %cst_29 [1, 2] : vector<1x8x1xf32> to vector<1xf32>
    %69 = vector.shape_cast %68 : vector<1xf32> to vector<1x1x1xf32>
    %70 = vector.extract %69[0, 0, 0] : f32 from vector<1x1x1xf32>
    %71 = vector.broadcast %70 : f32 to vector<1x1xf32>
    %72 = arith.addf %29, %71 : vector<1x1xf32>
    %73 = arith.mulf %32, %45 : vector<8x1xf32>
    %74 = vector.shape_cast %73 : vector<8x1xf32> to vector<1x8x1xf32>
    %cst_30 = arith.constant dense<0.000000e+00> : vector<1xf32>
    %75 = vector.multi_reduction <add>, %74, %cst_30 [1, 2] : vector<1x8x1xf32> to vector<1xf32>
    %76 = vector.shape_cast %75 : vector<1xf32> to vector<1x1x1xf32>
    %77 = vector.extract %76[0, 0, 0] : f32 from vector<1x1x1xf32>
    %78 = vector.broadcast %77 : f32 to vector<1x1xf32>
    %79 = arith.addf %30, %78 : vector<1x1xf32>
    %c1 = arith.constant 1 : index
    %c0_31 = arith.constant 0 : index
    %c0_32 = arith.constant 0 : index
    %80 = vector.load %arg1[%c1, %c0_31, %c0_32] : memref<3x8x1xf32, #tpu.memory_space<vmem>>, vector<1x8x1xf32>
    %81 = vector.shape_cast %80 : vector<1x8x1xf32> to vector<8x1xf32>
    %c0_33 = arith.constant 0 : index
    %c0_34 = arith.constant 0 : index
    %82 = vector.load %arg6[%c0_33, %c0_34] : memref<8x1024xf32, #tpu.memory_space<vmem>>, vector<8x1024xf32>
    %83 = arith.mulf %82, %82 : vector<8x1024xf32>
    %cst_35 = arith.constant dense<0.000000e+00> : vector<8x1xf32>
    %84 = tpu.matmul %83, %1, %cst_35 {dimension_numbers = #tpu.dot_dimension_numbers<[1], [0], [0], [1], [0, 0, 1, 1], [], []>} : vector<8x1024xf32>, vector<1024x1xf32>, vector<8x1xf32> -> vector<8x1xf32>
    %cst_36 = arith.constant 1.000000e-24 : f32
    %85 = vector.broadcast %cst_36 : f32 to vector<8x1xf32>
    %86 = arith.maximumf %84, %85 : vector<8x1xf32>
    %87 = math.rsqrt %86 : vector<8x1xf32>
    %88 = vector.broadcast %87 : vector<8x1xf32> to vector<8x1024xf32>
    %89 = arith.mulf %82, %88 : vector<8x1024xf32>
    %90 = arith.subf %89, %8 : vector<8x1024xf32>
    %91 = math.absf %90 : vector<8x1024xf32>
    %cst_37 = arith.constant dense<0.000000e+00> : vector<8x1xf32>
    %92 = tpu.matmul %91, %1, %cst_37 {dimension_numbers = #tpu.dot_dimension_numbers<[1], [0], [0], [1], [0, 0, 1, 1], [], []>} : vector<8x1024xf32>, vector<1024x1xf32>, vector<8x1xf32> -> vector<8x1xf32>
    %cst_38 = arith.constant 9.765625E-4 : f32
    %93 = vector.broadcast %cst_38 : f32 to vector<8x1xf32>
    %94 = arith.mulf %92, %93 : vector<8x1xf32>
    %c1_39 = arith.constant 1 : index
    %c0_40 = arith.constant 0 : index
    %c0_41 = arith.constant 0 : index
    %95 = vector.load %arg4[%c1_39, %c0_40, %c0_41] : memref<3x8x128xf32, #tpu.memory_space<vmem>>, vector<1x8x128xf32>
    %96 = vector.shape_cast %95 : vector<1x8x128xf32> to vector<8x128xf32>
    %cst_42 = arith.constant 0.333333343 : f32
    %97 = vector.broadcast %cst_42 : f32 to vector<8x128xf32>
    %98 = arith.mulf %96, %97 : vector<8x128xf32>
    %cst_43 = arith.constant dense<0xFF800000> : vector<8xf32>
    %99 = vector.multi_reduction <maximumf>, %98, %cst_43 [1] : vector<8x128xf32> to vector<8xf32>
    %100 = vector.shape_cast %99 : vector<8xf32> to vector<8x1xf32>
    %101 = vector.broadcast %100 : vector<8x1xf32> to vector<8x128xf32>
    %102 = arith.subf %98, %101 : vector<8x128xf32>
    %103 = math.exp %102 : vector<8x128xf32>
    %cst_44 = arith.constant dense<0.000000e+00> : vector<8xf32>
    %104 = vector.multi_reduction <add>, %103, %cst_44 [1] : vector<8x128xf32> to vector<8xf32>
    %105 = vector.shape_cast %104 : vector<8xf32> to vector<8x1xf32>
    %106 = math.log %105 : vector<8x1xf32>
    %107 = vector.broadcast %106 : vector<8x1xf32> to vector<8x128xf32>
    %108 = arith.subf %102, %107 : vector<8x128xf32>
    %109 = arith.mulf %25, %108 : vector<8x128xf32>
    %cst_45 = arith.constant dense<0.000000e+00> : vector<8xf32>
    %110 = vector.multi_reduction <add>, %109, %cst_45 [1] : vector<8x128xf32> to vector<8xf32>
    %111 = vector.shape_cast %110 : vector<8xf32> to vector<8x1xf32>
    %112 = arith.subf %28, %111 : vector<8x1xf32>
    %cst_46 = arith.constant 7.031250e-02 : f32
    %113 = vector.broadcast %cst_46 : f32 to vector<8x1xf32>
    %114 = arith.mulf %112, %113 : vector<8x1xf32>
    %115 = arith.mulf %81, %114 : vector<8x1xf32>
    %116 = vector.shape_cast %115 : vector<8x1xf32> to vector<1x8x1xf32>
    %cst_47 = arith.constant dense<0.000000e+00> : vector<1xf32>
    %117 = vector.multi_reduction <add>, %116, %cst_47 [1, 2] : vector<1x8x1xf32> to vector<1xf32>
    %118 = vector.shape_cast %117 : vector<1xf32> to vector<1x1x1xf32>
    %119 = vector.extract %118[0, 0, 0] : f32 from vector<1x1x1xf32>
    %120 = vector.broadcast %119 : f32 to vector<1x1xf32>
    %121 = arith.addf %72, %120 : vector<1x1xf32>
    %122 = arith.mulf %81, %94 : vector<8x1xf32>
    %123 = vector.shape_cast %122 : vector<8x1xf32> to vector<1x8x1xf32>
    %cst_48 = arith.constant dense<0.000000e+00> : vector<1xf32>
    %124 = vector.multi_reduction <add>, %123, %cst_48 [1, 2] : vector<1x8x1xf32> to vector<1xf32>
    %125 = vector.shape_cast %124 : vector<1xf32> to vector<1x1x1xf32>
    %126 = vector.extract %125[0, 0, 0] : f32 from vector<1x1x1xf32>
    %127 = vector.broadcast %126 : f32 to vector<1x1xf32>
    %128 = arith.addf %79, %127 : vector<1x1xf32>
    %c2 = arith.constant 2 : index
    %c0_49 = arith.constant 0 : index
    %c0_50 = arith.constant 0 : index
    %129 = vector.load %arg1[%c2, %c0_49, %c0_50] : memref<3x8x1xf32, #tpu.memory_space<vmem>>, vector<1x8x1xf32>
    %130 = vector.shape_cast %129 : vector<1x8x1xf32> to vector<8x1xf32>
    %c0_51 = arith.constant 0 : index
    %c0_52 = arith.constant 0 : index
    %131 = vector.load %arg7[%c0_51, %c0_52] : memref<8x1024xf32, #tpu.memory_space<vmem>>, vector<8x1024xf32>
    %132 = arith.mulf %131, %131 : vector<8x1024xf32>
    %cst_53 = arith.constant dense<0.000000e+00> : vector<8x1xf32>
    %133 = tpu.matmul %132, %1, %cst_53 {dimension_numbers = #tpu.dot_dimension_numbers<[1], [0], [0], [1], [0, 0, 1, 1], [], []>} : vector<8x1024xf32>, vector<1024x1xf32>, vector<8x1xf32> -> vector<8x1xf32>
    %cst_54 = arith.constant 1.000000e-24 : f32
    %134 = vector.broadcast %cst_54 : f32 to vector<8x1xf32>
    %135 = arith.maximumf %133, %134 : vector<8x1xf32>
    %136 = math.rsqrt %135 : vector<8x1xf32>
    %137 = vector.broadcast %136 : vector<8x1xf32> to vector<8x1024xf32>
    %138 = arith.mulf %131, %137 : vector<8x1024xf32>
    %139 = arith.subf %138, %8 : vector<8x1024xf32>
    %140 = math.absf %139 : vector<8x1024xf32>
    %cst_55 = arith.constant dense<0.000000e+00> : vector<8x1xf32>
    %141 = tpu.matmul %140, %1, %cst_55 {dimension_numbers = #tpu.dot_dimension_numbers<[1], [0], [0], [1], [0, 0, 1, 1], [], []>} : vector<8x1024xf32>, vector<1024x1xf32>, vector<8x1xf32> -> vector<8x1xf32>
    %cst_56 = arith.constant 9.765625E-4 : f32
    %142 = vector.broadcast %cst_56 : f32 to vector<8x1xf32>
    %143 = arith.mulf %141, %142 : vector<8x1xf32>
    %c2_57 = arith.constant 2 : index
    %c0_58 = arith.constant 0 : index
    %c0_59 = arith.constant 0 : index
    %144 = vector.load %arg4[%c2_57, %c0_58, %c0_59] : memref<3x8x128xf32, #tpu.memory_space<vmem>>, vector<1x8x128xf32>
    %145 = vector.shape_cast %144 : vector<1x8x128xf32> to vector<8x128xf32>
    %cst_60 = arith.constant 0.333333343 : f32
    %146 = vector.broadcast %cst_60 : f32 to vector<8x128xf32>
    %147 = arith.mulf %145, %146 : vector<8x128xf32>
    %cst_61 = arith.constant dense<0xFF800000> : vector<8xf32>
    %148 = vector.multi_reduction <maximumf>, %147, %cst_61 [1] : vector<8x128xf32> to vector<8xf32>
    %149 = vector.shape_cast %148 : vector<8xf32> to vector<8x1xf32>
    %150 = vector.broadcast %149 : vector<8x1xf32> to vector<8x128xf32>
    %151 = arith.subf %147, %150 : vector<8x128xf32>
    %152 = math.exp %151 : vector<8x128xf32>
    %cst_62 = arith.constant dense<0.000000e+00> : vector<8xf32>
    %153 = vector.multi_reduction <add>, %152, %cst_62 [1] : vector<8x128xf32> to vector<8xf32>
    %154 = vector.shape_cast %153 : vector<8xf32> to vector<8x1xf32>
    %155 = math.log %154 : vector<8x1xf32>
    %156 = vector.broadcast %155 : vector<8x1xf32> to vector<8x128xf32>
    %157 = arith.subf %151, %156 : vector<8x128xf32>
    %158 = arith.mulf %25, %157 : vector<8x128xf32>
    %cst_63 = arith.constant dense<0.000000e+00> : vector<8xf32>
    %159 = vector.multi_reduction <add>, %158, %cst_63 [1] : vector<8x128xf32> to vector<8xf32>
    %160 = vector.shape_cast %159 : vector<8xf32> to vector<8x1xf32>
    %161 = arith.subf %28, %160 : vector<8x1xf32>
    %cst_64 = arith.constant 7.031250e-02 : f32
    %162 = vector.broadcast %cst_64 : f32 to vector<8x1xf32>
    %163 = arith.mulf %161, %162 : vector<8x1xf32>
    %164 = arith.mulf %130, %163 : vector<8x1xf32>
    %165 = vector.shape_cast %164 : vector<8x1xf32> to vector<1x8x1xf32>
    %cst_65 = arith.constant dense<0.000000e+00> : vector<1xf32>
    %166 = vector.multi_reduction <add>, %165, %cst_65 [1, 2] : vector<1x8x1xf32> to vector<1xf32>
    %167 = vector.shape_cast %166 : vector<1xf32> to vector<1x1x1xf32>
    %168 = vector.extract %167[0, 0, 0] : f32 from vector<1x1x1xf32>
    %169 = vector.broadcast %168 : f32 to vector<1x1xf32>
    %170 = arith.addf %121, %169 : vector<1x1xf32>
    %171 = arith.mulf %130, %143 : vector<8x1xf32>
    %172 = vector.shape_cast %171 : vector<8x1xf32> to vector<1x8x1xf32>
    %cst_66 = arith.constant dense<0.000000e+00> : vector<1xf32>
    %173 = vector.multi_reduction <add>, %172, %cst_66 [1, 2] : vector<1x8x1xf32> to vector<1xf32>
    %174 = vector.shape_cast %173 : vector<1xf32> to vector<1x1x1xf32>
    %175 = vector.extract %174[0, 0, 0] : f32 from vector<1x1x1xf32>
    %176 = vector.broadcast %175 : f32 to vector<1x1xf32>
    %177 = arith.addf %128, %176 : vector<1x1xf32>
    %cst_67 = arith.constant 1.000000e+00 : f32
    %178 = vector.broadcast %cst_67 : f32 to vector<1x1xf32>
    %179 = arith.mulf %178, %170 : vector<1x1xf32>
    %cst_68 = arith.constant 3.000000e-02 : f32
    %180 = vector.broadcast %cst_68 : f32 to vector<1x1xf32>
    %181 = arith.mulf %180, %177 : vector<1x1xf32>
    %182 = arith.addf %179, %181 : vector<1x1xf32>
    %cst_69 = arith.constant 3.125000e-02 : f32
    %183 = vector.broadcast %cst_69 : f32 to vector<1x1xf32>
    %184 = arith.mulf %182, %183 : vector<1x1xf32>
    %185 = vector.shape_cast %184 : vector<1x1xf32> to vector<1x1xf32>
    %186 = vector.broadcast %185 : vector<1x1xf32> to vector<1x128xf32>
    %c0_70 = arith.constant 0 : index
    %c0_71 = arith.constant 0 : index
    %c0_72 = arith.constant 0 : index
    %187 = vector.load %arg8[%c0_70, %c0_71, %c0_72] : memref<1x1x128xf32, #tpu.memory_space<vmem>>, vector<1x1x128xf32>
    %188 = vector.shape_cast %187 : vector<1x1x128xf32> to vector<1x128xf32>
    %189 = vector.shape_cast %186 : vector<1x128xf32> to vector<1x1x128xf32>
    tpu.vector_store %arg8[%c0_70, %c0_71, %c0_72], %189 {strides = array<i32>} : memref<1x1x128xf32, #tpu.memory_space<vmem>>, vector<1x1x128xf32>,
    return
  }
  func.func @transform_0(%arg0: i32) -> (i32, i32, i32) {
    %c0_i32 = arith.constant 0 : i32
    %c0_i32_0 = arith.constant 0 : i32
    %c0_i32_1 = arith.constant 0 : i32
    return %c0_i32, %arg0, %c0_i32_0 : i32, i32, i32
  }
  func.func @transform_1(%arg0: i32) -> (i32, i32) {
    %c0_i32 = arith.constant 0 : i32
    %c0_i32_0 = arith.constant 0 : i32
    return %arg0, %c0_i32 : i32, i32
  }
  func.func @transform_2(%arg0: i32) -> (i32, i32) {
    %c0_i32 = arith.constant 0 : i32
    %c0_i32_0 = arith.constant 0 : i32
    return %arg0, %c0_i32 : i32, i32
  }
  func.func @transform_3(%arg0: i32) -> (i32, i32, i32) {
    %c0_i32 = arith.constant 0 : i32
    %c0_i32_0 = arith.constant 0 : i32
    %c0_i32_1 = arith.constant 0 : i32
    return %c0_i32, %arg0, %c0_i32_0 : i32, i32, i32
  }
  func.func @transform_4(%arg0: i32) -> (i32, i32) {
    %c0_i32 = arith.constant 0 : i32
    %c0_i32_0 = arith.constant 0 : i32
    return %arg0, %c0_i32 : i32, i32
  }
  func.func @transform_5(%arg0: i32) -> (i32, i32) {
    %c0_i32 = arith.constant 0 : i32
    %c0_i32_0 = arith.constant 0 : i32
    return %arg0, %c0_i32 : i32, i32
  }
  func.func @transform_6(%arg0: i32) -> (i32, i32) {
    %c0_i32 = arith.constant 0 : i32
    %c0_i32_0 = arith.constant 0 : i32
    return %arg0, %c0_i32 : i32, i32
  }
  func.func @transform_7(%arg0: i32) -> (i32, i32, i32) {
    %c0_i32 = arith.constant 0 : i32
    %c0_i32_0 = arith.constant 0 : i32
    %c0_i32_1 = arith.constant 0 : i32
    return %arg0, %c0_i32, %c0_i32_0 : i32, i32, i32
  }
}

</mosaic_0001>

<bundles_post_ra>
// kernel: tpu_custom_call.1
= control target key start
LH: loop header
LB: loop body
LE: loop exit
PB: predicated region body
PF: predicated region fallthrough
CT: control target
= control target key end

     0   :  { %s4102_s0 = inlined_call_operand.vmem [shape: f32[3,32,1], index: 0, kind: input, shape index: {}]   ;;  %s4103_s1 = inlined_call_operand.hbm [shape: f32[32,1024], index: 1, kind: input, shape index: {}]   ;;  %s4104_s2 = inlined_call_operand.hbm [shape: f32[32,128], index: 2, kind: input, shape index: {}]   ;;  %s4105_s3 = inlined_call_operand.vmem [shape: f32[3,32,128], index: 3, kind: input, shape index: {}]   ;;  %s4106_s4 = inlined_call_operand.hbm [shape: f32[32,1024], index: 4, kind: input, shape index: {}]   ;;  %s4107_s5 = inlined_call_operand.hbm [shape: f32[32,1024], index: 5, kind: input, shape index: {}]   ;;  %s4108_s6 = inlined_call_operand.hbm [shape: f32[32,1024], index: 6, kind: input, shape index: {}]   ;;  %s4109_s7 = inlined_call_operand.hbm [shape: f32[4,1,128], index: 7, kind: output, shape index: {}]  }
   0x1   :  { %4114 = sst [smem:[#allocation22_spill]] %s4102_s0 }
   0x2   :  { %4115 = sst [smem:[#allocation23_spill]] %s4103_s1 }
   0x3   :  { %12 = vsyncpa [#allocation4], 0 }
   0x4   :  { %14 = vsyncpa [#allocation4 + $0x1], 0 }
   0x5   :  { %15 = vsyncpa [#allocation7], 0 }
   0x6   :  { %17 = vsyncpa [#allocation7 + $0x1], 0 }
   0x7   :  { %18 = vsyncpa [#allocation11], 0 }
   0x8   :  { %20 = vsyncpa [#allocation11 + $0x1], 0 }
   0x9   :  { %21 = vsyncpa [#allocation5], 0 }
   0xa   :  { %23 = vsyncpa [#allocation5 + $0x1], 0  ;;  %s2666_s24 = smov 0   ;;  %s2668_s25 = smov 0  }
   0xb   :  { %s2670_s26 = smov 0   ;;  %s2672_s27 = smov 0  }
   0xc LB: > { %4116 = sst [smem:[#allocation18_spill]] %s2618_s26  ;;  %s2687_s28 = sadd.s32 4294967295, %s2622_s27   ;;  %s2622_s27 = sphi %s2672_s27, %s4127_s27   ;;  %s2618_s26 = sphi %s2670_s26, %s4129_s26   ;;  %s2614_s25 = sphi %s2668_s25, %s4131_s25   ;;  %s2610_s24 = sphi %s2666_s24, %s4130_s24  }
   0xd   : > { %s2279_s29 = sadd.s32 4294967294, %s2622_s27   ;;  %s2691_s30 = sadd.s32 1, %s2622_s27  }
   0xe   : > { %4117 = sst [smem:[#allocation19_spill]] %s2691_s30  ;;  %s36_s8 = sadd.s32 1, %s2618_s26 }
   0xf   : > { %s33_s9 = ssub.s32 %s2622_s27, %s2691_s30  ;;  %p43_p0 = scmp.ne.s32.totalorder %s2618_s26, %s2614_s25 }
  0x10   : > { %p34_p1 = scmp.eq.s32.totalorder %s33_s9, 0  ;;  %p44_p2 = scmp.eq.s32.totalorder %s2622_s27, 0 }
  0x11   : > { %p75_p3 = scmp.ne.s32.totalorder %s2614_s25, %s2610_s24  ;;  %p76_p4 = scmp.eq.s32.totalorder %s2687_s28, 0 }
  0x12   : > { %s2703_s10 = scalar_select %p34_p1, %s2618_s26, %s36_s8  }
  0x13   : > { %p2705_p5 = por %p44_p2, %p43_p0  ;;  %p2709_p6 = por %p76_p4, %p75_p3 }
  0x14   : > { %4118 = sst [smem:[#allocation20_spill]] %s2703_s10  ;;  %p229_p7 = scmp.eq.s32.totalorder %s2687_s28, 3 }
  0x15   : > { %p235_p8 = scmp.eq.s32.totalorder %s2279_s29, 3  ;;  %p2281_p11 = scmp.ge.s32.totalorder %s2622_s27, 4 }
  0x16   : > { %p2714_p9 = por %p229_p7, %p43_p0 }
  0x17   : > { %p2718_p10 = por %p235_p8, %p75_p3  ;;  %251 = sbr.rel (%p2281_p11) target bundleno = 127 (0x7f), region = 16 }
  0x19   : > { %s4122_s14 = scalar_select %p2718_p10, 1, 0 }
  0x1b   : > { %4123 = sst [smem:[#allocation21_spill]] %s4122_s14 }
  0x1c   : > { %254 = sbr.rel (!%p2705_p5) target bundleno = 41 (0x29), region = 20  ;;  %s256_s15 = sand.u32 (%p2705_p5), 1, %s2618_s26  }
  0x1d   : > { %s2282_s16 = sshll.u32 (%p2705_p5), %s2622_s27, 3  ;;  %s2314_s17 = smul.u32 (%p2705_p5), 24, %s256_s15 }
  0x1e   : > { %s4124_s0 = sld [smem:[#allocation22_spill]] (%p2705_p5) }
  0x1f   : > { %s258_s21 = scalar_lea.vmem (%p2705_p5), [#allocation2], %s2314_s17 }
  0x24   : > { %s260_s20 = scalar_lea.vmem %s4124_s0, %s2282_s16 }
  0x25   : > { %v293_v0 = vld [vmem:[%s260_s20] sm:$0xff] }
  0x26   : > { %v295_v1 = vld [vmem:[%s260_s20 + $0x20] sm:$0xff]  ;;  %294 = vst [vmem:[%s258_s21] sm:$0xff] %v293_v0 }
  0x27   : > { %v297_v2 = vld [vmem:[%s260_s20 + $0x40] sm:$0xff]  ;;  %296 = vst [vmem:[%s258_s21 + $0x8] sm:$0xff] %v295_v1 }
  0x28   : > { %298 = vst [vmem:[%s258_s21 + $0x10] sm:$0xff] %v297_v2 }
  0x29 PF: > { %s2731_s22 = sand.u32 1, %s2618_s26   ;;  %s2734_s23 = sshll.u32 %s2622_s27, 6 }
  0x2a   : > { %s2737_s29 = sshll.u32 %s2731_s22, 6  ;;  %s4125_s1 = sld [smem:[#allocation23_spill]] }
  0x2b   : > { %s309_s17 = scalar_lea.vmem [#allocation3], %s2737_s29  ;;  %s306_s19 = scalar_lea.sflag [#allocation4], %s2731_s22 }
  0x2c   : > { %s318_s18 = sshll.u32 %s309_s17, 4  ;;  %s319_s18 = int_to_ptr.vmem [resolvable:$true] %s318_s18 }
  0x30   : > { %s314_s15 = scalar_lea.hbm %s4125_s1, %s2734_s23  ;;  %s2414_s26 = scalar_lea.hbm %s4125_s1, 256 }
  0x31   : > { %s316_s16 = sshll.u32 %s314_s15, 4  ;;  %s317_s16 = int_to_ptr.hbm [resolvable:$true] %s316_s16 }
  0x32   : > { %s2408_s20 = sshra.s32 %s317_s16, 4  ;;  %s2409_s20 = int_to_ptr.hbm [resolvable:$true] %s2408_s20 }
  0x33   : > { %s2410_s21 = scalar_lea.hbm %s2409_s20, 64  ;;  %p2415_p1 = scmp.lt.s32.totalorder %s2409_s20, %s4125_s1 }
  0x34   : > { %p2411_p12 = scmp.ne.s32.totalorder %s2409_s20, %s2410_s21  ;;  %p2416_p2 = scmp.lt.s32.totalorder %s2414_s26, %s2410_s21 }
  0x36   : > { %p2412_p13 = pnand %p2411_p12, %p2705_p5  ;;  %p2417_p3 = por %p2416_p2, %p2415_p1 }
  0x38   : > { %p2413_p0 = pneg %p2412_p13 }
  0x3a   : > { %p2418_p4 = pnand %p2417_p3, %p2413_p0 }
  0x3c   : > { %2421 = shalt.err (!%p2418_p4)
}
  0x3d   : > { %2329 = dma.hbm_to_vmem [thread:$0]  (%p2705_p5), %s317_s16, 1024, %s319_s18, %s306_s19  }
  0x3e   : > { %s325_s15 = sand.u32 1, %s2622_s27   ;;  %s2286_s17 = sshll.u32 %s2731_s22, 3 }
  0x3f   : > { %s2287_s0 = sshll.u32 %s2622_s27, 3  ;;  %s329_s10 = scalar_lea.vmem [#allocation6], %s2286_s17 }
  0x40   : > { %s337_s30 = sshll.u32 %s329_s10, 4  ;;  %s333_s26 = scalar_lea.hbm %s4104_s2, %s2287_s0  ;;  %s338_s30 = int_to_ptr.vmem [resolvable:$true] %s337_s30 }
  0x41   : > { %s335_s20 = sshll.u32 %s333_s26, 4  ;;  %s2763_s21 = scalar_lea.sflag [#allocation7], %s325_s15  ;;  %s336_s20 = int_to_ptr.hbm [resolvable:$true] %s335_s20 }
  0x42   : > { %s2436_s9 = sshra.s32 %s336_s20, 4  ;;  %s2442_s19 = scalar_lea.hbm %s4104_s2, 32  ;;  %s2437_s9 = int_to_ptr.hbm [resolvable:$true] %s2436_s9 }
  0x43   : > { %s2438_s1 = scalar_lea.hbm %s2437_s9, 8  ;;  %p2443_p12 = scmp.lt.s32.totalorder %s2437_s9, %s4104_s2 }
  0x44   : > { %p2439_p7 = scmp.ne.s32.totalorder %s2437_s9, %s2438_s1  ;;  %p2444_p13 = scmp.lt.s32.totalorder %s2442_s19, %s2438_s1 }
  0x46   : > { %p2440_p8 = pnand %p2439_p7, %p2705_p5  ;;  %p2445_p0 = por %p2444_p13, %p2443_p12 }
  0x48   : > { %p2441_p11 = pneg %p2440_p8 }
  0x4a   : > { %p2446_p1 = pnand %p2445_p0, %p2441_p11 }
  0x4c   : > { %2449 = shalt.err (!%p2446_p1)
}
  0x4d   : > { %2330 = dma.hbm_to_vmem [thread:$0]  (%p2705_p5), %s336_s20, 128, %s338_s30, %s2763_s21  }
  0x4e   : > { %343 = sbr.rel (!%p2705_p5) target bundleno = 85 (0x55), region = 66  ;;  %s349_s16 = scalar_lea.vmem (%p2705_p5), %s4105_s3, %s2287_s0 }
  0x4f   : > { %s2315_s10 = smul.u32 (%p2705_p5), 24, %s2731_s22  ;;  %v382_v3 = vld [vmem:[%s349_s16] sm:$0xff] (%p2705_p5) }
  0x50   : > { %v384_v4 = vld [vmem:[%s349_s16 + $0x20] sm:$0xff] (%p2705_p5) }
  0x51   : > { %v386_v5 = vld [vmem:[%s349_s16 + $0x40] sm:$0xff] (%p2705_p5)  ;;  %s347_s1 = scalar_lea.vmem (%p2705_p5), [#allocation8], %s2315_s10 }
  0x52   : > { %383 = vst [vmem:[%s347_s1] sm:$0xff] (%p2705_p5), %v382_v3 }
  0x53   : > { %385 = vst [vmem:[%s347_s1 + $0x8] sm:$0xff] %v384_v4 }
  0x54   : > { %387 = vst [vmem:[%s347_s1 + $0x10] sm:$0xff] %v386_v5 }
  0x55 PF: > { %s423_s22 = scalar_lea.hbm %s4107_s5, %s2734_s23  ;;  %s418_s20 = scalar_lea.vmem [#allocation10], %s2737_s29 }
  0x56   : > { %s427_s18 = sshll.u32 %s418_s20, 4  ;;  %s425_s19 = sshll.u32 %s423_s22, 4  ;;  %s428_s18 = int_to_ptr.vmem [resolvable:$true] %s427_s18  ;;  %s426_s19 = int_to_ptr.hbm [resolvable:$true] %s425_s19 }
  0x57   : > { %s2789_s0 = scalar_lea.sflag [#allocation11], %s325_s15  ;;  %s2464_s17 = sshra.s32 %s426_s19, 4  ;;  %s2465_s17 = int_to_ptr.hbm [resolvable:$true] %s2464_s17 }
  0x58   : > { %s2466_s14 = scalar_lea.hbm %s2465_s17, 64  ;;  %s2470_s26 = scalar_lea.hbm %s4107_s5, 256 }
  0x59   : > { %p2467_p2 = scmp.ne.s32.totalorder %s2465_s17, %s2466_s14  ;;  %p2471_p7 = scmp.lt.s32.totalorder %s2465_s17, %s4107_s5 }
  0x5a   : > { %p2472_p8 = scmp.lt.s32.totalorder %s2470_s26, %s2466_s14 }
  0x5b   : > { %p2468_p3 = pnand %p2467_p2, %p2705_p5 }
  0x5c   : > { %p2473_p11 = por %p2472_p8, %p2471_p7 }
  0x5d   : > { %p2469_p4 = pneg %p2468_p3 }
  0x5f   : > { %p2474_p12 = pnand %p2473_p11, %p2469_p4 }
  0x61   : > { %2477 = shalt.err (!%p2474_p12)
}
  0x62   : > { %2332 = dma.hbm_to_vmem [thread:$0]  (%p2705_p5), %s426_s19, 1024, %s428_s18, %s2789_s0  }
  0x63   : > { %s403_s30 = scalar_lea.hbm %s4106_s4, %s2734_s23  ;;  %s398_s22 = scalar_lea.vmem [#allocation9], %s2737_s29 }
  0x64   : > { %s407_s20 = sshll.u32 %s398_s22, 4  ;;  %s405_s10 = sshll.u32 %s403_s30, 4  ;;  %s408_s20 = int_to_ptr.vmem [resolvable:$true] %s407_s20  ;;  %s406_s10 = int_to_ptr.hbm [resolvable:$true] %s405_s10 }
  0x65   : > { %s2492_s17 = sshra.s32 %s406_s10, 4  ;;  %s2498_s18 = scalar_lea.hbm %s4106_s4, 256  ;;  %s2493_s17 = int_to_ptr.hbm [resolvable:$true] %s2492_s17 }
  0x66   : > { %s2494_s14 = scalar_lea.hbm %s2493_s17, 64  ;;  %p2499_p2 = scmp.lt.s32.totalorder %s2493_s17, %s4106_s4 }
  0x67   : > { %p2495_p13 = scmp.ne.s32.totalorder %s2493_s17, %s2494_s14  ;;  %p2500_p3 = scmp.lt.s32.totalorder %s2498_s18, %s2494_s14 }
  0x69   : > { %p2496_p0 = pnand %p2495_p13, %p2705_p5  ;;  %p2501_p4 = por %p2500_p3, %p2499_p2 }
  0x6b   : > { %p2497_p1 = pneg %p2496_p0 }
  0x6d   : > { %p2502_p7 = pnand %p2501_p4, %p2497_p1 }
  0x6f   : > { %2505 = shalt.err (!%p2502_p7)
}
  0x70   : > { %2331 = dma.hbm_to_vmem [thread:$0]  (%p2705_p5), %s406_s10, 1024, %s408_s20, %s2763_s21  }
  0x71   : > { %s443_s9 = scalar_lea.hbm %s4108_s6, %s2734_s23  ;;  %s438_s30 = scalar_lea.vmem [#allocation12], %s2737_s29 }
  0x72   : > { %s447_s22 = sshll.u32 %s438_s30, 4  ;;  %s445_s8 = sshll.u32 %s443_s9, 4  ;;  %s448_s22 = int_to_ptr.vmem [resolvable:$true] %s447_s22  ;;  %s446_s8 = int_to_ptr.hbm [resolvable:$true] %s445_s8 }
  0x73   : > { %s2520_s17 = sshra.s32 %s446_s8, 4  ;;  %s2526_s21 = scalar_lea.hbm %s4108_s6, 256  ;;  %s2521_s17 = int_to_ptr.hbm [resolvable:$true] %s2520_s17 }
  0x74   : > { %s2522_s14 = scalar_lea.hbm %s2521_s17, 64  ;;  %p2527_p13 = scmp.lt.s32.totalorder %s2521_s17, %s4108_s6 }
  0x75   : > { %p2523_p8 = scmp.ne.s32.totalorder %s2521_s17, %s2522_s14  ;;  %p2528_p0 = scmp.lt.s32.totalorder %s2526_s21, %s2522_s14 }
  0x77   : > { %p2524_p11 = pnand %p2523_p8, %p2705_p5  ;;  %p2529_p1 = por %p2528_p0, %p2527_p13 }
  0x79   : > { %p2525_p12 = pneg %p2524_p11 }
  0x7b   : > { %p2530_p2 = pnand %p2529_p1, %p2525_p12 }
  0x7d   : > { %2533 = shalt.err (!%p2530_p2)
}
  0x7e   : > { %2333 = dma.hbm_to_vmem [thread:$0]  (%p2705_p5), %s446_s8, 1024, %s448_s22, %s2789_s0  }
  0x7f PF: > { %p2298_p3 = scmp.ge.s32.totalorder %s2622_s27, 1  ;;  %p452_p4 = scmp.lt.s32.totalorder %s2622_s27, 5 }
  0x81   : > { %p453_p7 = pnand %p2298_p3, %p452_p4 }
  0x82   : > { %s2837_s23 = sand.u32 (!%p453_p7), 1, %s2614_s25  }
  0x83   : > { %456 = sbr.rel (%p453_p7) target bundleno = 1738 (0x6ca), region = 116  ;;  %s2841_s19 = sshll.u32 (!%p453_p7), %s2837_s23, 6 }
  0x84   : > { %s2316_s29 = smul.u32 (!%p453_p7), 24, %s2837_s23  ;;  %s466_s0 = scalar_lea.sflag (!%p453_p7), [#allocation4], %s2837_s23 }
  0x85   : > { %s2847_s16 = scalar_lea.vmem (!%p453_p7), [#allocation3], %s2841_s19 }
  0x86   : > { %s2843_s11 = scalar_lea.vmem (!%p453_p7), [#allocation2], %s2316_s29 }
  0x88   : > { %2593 = dma.done.wait (%p2709_p6), %s466_s0, 1024  }
  0x89   : > { %2595 = vsyncadd (%p2709_p6), %s466_s0, 4294966272  ;;  %s475_s1 = sand.u32 1, %s2687_s28   ;;  %s2300_s15 = sshll.u32 %s2837_s23, 3 }
  0x8a   : > { %s476_s9 = scalar_lea.sflag [#allocation7], %s475_s1  ;;  %s2855_s30 = scalar_lea.vmem [#allocation6], %s2300_s15 }
  0x8b   : > { %2597 = dma.done.wait (%p2709_p6), %s476_s9, 1152  }
  0x8c   : > { %2599 = vsyncadd (%p2709_p6), %s476_s9, 4294966144  ;;  %s2861_s22 = scalar_lea.vmem [#allocation8], %s2316_s29  ;;  %s2864_s8 = scalar_lea.vmem [#allocation9], %s2841_s19 }
  0x8d   : > { %s503_s17 = scalar_lea.sflag [#allocation11], %s475_s1  ;;  %s2867_s14 = scalar_lea.vmem [#allocation10], %s2841_s19 }
  0x8e   : > { %2601 = dma.done.wait (%p2709_p6), %s503_s17, 2048  }
  0x8f   : > { %2603 = vsyncadd (%p2709_p6), %s503_s17, 4294965248  ;;  %v2624_v6 = vmov 1.0   ;;  %v2972_v7 = vld [vmem:[%s2847_s16 + $0x10] sm:$0xff]  ;;  %v2979_v8 = vld [vmem:[%s2847_s16] sm:$0xff]  ;;  %v2625_v40 = vmov 0   ;;  %vm1202_vm10 = vcmask 7168   ;;  %s2087_s0 = scalar_lea.hbm %s4109_s7, %s2687_s28 }
  0x90   : > { %591 = vmatpush.msra.mxu0 %v2624_v6  ;;  %631 = vmatpush.msra.mxu2 %v2624_v6  ;;  %v585_v9 = vmul.f32 %v2972_v7, %v2972_v7  ;;  %v2986_v10 = vld [vmem:[%s2847_s16 + $0x18] sm:$0xff]  ;;  %v583_v11 = vmul.f32 %v2979_v8, %v2979_v8  ;;  %v2995_v12 = vld [vmem:[%s2847_s16 + $0x8] sm:$0xff]  ;;  %v3009_v15 = vld [vmem:[%s2847_s16 + $0x30] sm:$0xff]  ;;  %s3830_s12 = scalar_lea.vmem [#allocation12], %s2841_s19  ;;  %s2091_s15 = sshll.u32 %s2087_s0, 4  ;;  %s2092_s15 = int_to_ptr.hbm [resolvable:$true] %s2091_s15 }
  0x91   : > { %611 = vmatpush.msra.mxu1 %v2624_v6  ;;  %651 = vmatpush.msra.mxu3 %v2624_v6  ;;  %v586_v13 = vmul.f32 %v2986_v10, %v2986_v10  ;;  %v584_v14 = vmul.f32 %v2995_v12, %v2995_v12  ;;  %v3015_v16 = vld [vmem:[%s2847_s16 + $0x20] sm:$0xff]  ;;  %v589_v17 = vmul.f32 %v3009_v15, %v3009_v15  ;;  %v3022_v18 = vld [vmem:[%s2847_s16 + $0x38] sm:$0xff]  ;;  %v3031_v20 = vld [vmem:[%s2847_s16 + $0x28] sm:$0xff]  ;;  %s574_s16 = scalar_lea.vmem [#allocation13], %s2837_s23  ;;  %s2079_s9 = scalar_lea.sflag [#allocation5], %s2837_s23 }
  0x92   : > { %592 = vmatpush.msra.mxu0 %v2624_v6  ;;  %632 = vmatpush.msra.mxu2 %v2624_v6  ;;  %v587_v19 = vmul.f32 %v3015_v16, %v3015_v16  ;;  %v590_v21 = vmul.f32 %v3022_v18, %v3022_v18  ;;  %v588_v22 = vmul.f32 %v3031_v20, %v3031_v20  ;;  %v3136_v23 = vld [vmem:[%s2864_s8 + $0x10] sm:$0xff]  ;;  %v3143_v24 = vld [vmem:[%s2864_s8] sm:$0xff]  ;;  %v3150_v26 = vld [vmem:[%s2864_s8 + $0x18] sm:$0xff]  ;;  %s2089_s1 = sshll.u32 %s574_s16, 4  ;;  %s2568_s17 = scalar_lea.hbm %s4109_s7, 4  ;;  %s2090_s1 = int_to_ptr.vmem [resolvable:$true] %s2089_s1 }
  0x93   : > { %612 = vmatpush.msra.mxu1 %v2624_v6  ;;  %652 = vmatpush.msra.mxu3 %v2624_v6  ;;  %v817_v25 = vmul.f32 %v3136_v23, %v3136_v23  ;;  %v815_v27 = vmul.f32 %v3143_v24, %v3143_v24  ;;  %v3159_v28 = vld [vmem:[%s2864_s8 + $0x8] sm:$0xff]  ;;  %v818_v29 = vmul.f32 %v3150_v26, %v3150_v26  ;;  %v3176_v31 = vld [vmem:[%s2864_s8 + $0x20] sm:$0xff]  ;;  %v3179_v32 = vld [vmem:[%s2864_s8 + $0x30] sm:$0xff] }
  0x94   : > { %593 = vmatpush.msra.mxu0 %v2624_v6  ;;  %633 = vmatpush.msra.mxu2 %v2624_v6  ;;  %v816_v30 = vmul.f32 %v3159_v28, %v3159_v28  ;;  %v3186_v33 = vld [vmem:[%s2864_s8 + $0x28] sm:$0xff]  ;;  %v3189_v34 = vld [vmem:[%s2864_s8 + $0x38] sm:$0xff]  ;;  %v819_v35 = vmul.f32 %v3176_v31, %v3176_v31  ;;  %v821_v36 = vmul.f32 %v3179_v32, %v3179_v32 }
  0x95   : > { %613 = vmatpush.msra.mxu1 %v2624_v6  ;;  %653 = vmatpush.msra.mxu3 %v2624_v6  ;;  %v820_v37 = vmul.f32 %v3186_v33, %v3186_v33  ;;  %v822_v38 = vmul.f32 %v3189_v34, %v3189_v34 }
  0x96   : > { %594 = vmatpush.msra.mxu0 %v2624_v6  ;;  %634 = vmatpush.msra.mxu2 %v2624_v6 }
  0x97   : > { %614 = vmatpush.msra.mxu1 %v2624_v6  ;;  %654 = vmatpush.msra.mxu3 %v2624_v6 }
  0x98   : > { %595 = vmatpush.msra.mxu0 %v2624_v6  ;;  %635 = vmatpush.msra.mxu2 %v2624_v6 }
  0x99   : > { %615 = vmatpush.msra.mxu1 %v2624_v6  ;;  %655 = vmatpush.msra.mxu3 %v2624_v6 }
  0x9a   : > { %596 = vmatpush.msra.mxu0 %v2624_v6  ;;  %636 = vmatpush.msra.mxu2 %v2624_v6 }
  0x9b   : > { %616 = vmatpush.msra.mxu1 %v2624_v6  ;;  %656 = vmatpush.msra.mxu3 %v2624_v6 }
  0x9c   : > { %597 = vmatpush.msra.mxu0 %v2624_v6  ;;  %637 = vmatpush.msra.mxu2 %v2624_v6 }
  0x9d   : > { %617 = vmatpush.msra.mxu1 %v2624_v6  ;;  %657 = vmatpush.msra.mxu3 %v2624_v6 }
  0x9e   : > { %598 = vmatpush.msra.mxu0 %v2624_v6  ;;  %638 = vmatpush.msra.mxu2 %v2624_v6 }
  0x9f   : > { %618 = vmatpush.msra.mxu1 %v2624_v6  ;;  %658 = vmatpush.msra.mxu3 %v2624_v6 }
  0xa0   : > { %599 = vmatpush.msra.mxu0 %v2624_v6  ;;  %639 = vmatpush.msra.mxu2 %v2624_v6 }
  0xa1   : > { %619 = vmatpush.msra.mxu1 %v2624_v6  ;;  %659 = vmatpush.msra.mxu3 %v2624_v6 }
  0xa2   : > { %600 = vmatpush.msra.mxu0 %v2624_v6  ;;  %640 = vmatpush.msra.mxu2 %v2624_v6 }
  0xa3   : > { %620 = vmatpush.msra.mxu1 %v2624_v6  ;;  %660 = vmatpush.msra.mxu3 %v2624_v6 }
  0xa4   : > { %601 = vmatpush.msra.mxu0 %v2624_v6  ;;  %641 = vmatpush.msra.mxu2 %v2624_v6 }
  0xa5   : > { %621 = vmatpush.msra.mxu1 %v2624_v6  ;;  %661 = vmatpush.msra.mxu3 %v2624_v6 }
  0xa6   : > { %602 = vmatpush.msra.mxu0 %v2624_v6  ;;  %642 = vmatpush.msra.mxu2 %v2624_v6 }
  0xa7   : > { %622 = vmatpush.msra.mxu1 %v2624_v6  ;;  %662 = vmatpush.msra.mxu3 %v2624_v6 }
  0xa8   : > { %603 = vmatpush.msra.mxu0 %v2624_v6  ;;  %643 = vmatpush.msra.mxu2 %v2624_v6 }
  0xa9   : > { %623 = vmatpush.msra.mxu1 %v2624_v6  ;;  %663 = vmatpush.msra.mxu3 %v2624_v6 }
  0xaa   : > { %604 = vmatpush.msra.mxu0 %v2624_v6  ;;  %644 = vmatpush.msra.mxu2 %v2624_v6 }
  0xab   : > { %624 = vmatpush.msra.mxu1 %v2624_v6  ;;  %664 = vmatpush.msra.mxu3 %v2624_v6 }
  0xac   : > { %605 = vmatpush.msra.mxu0 %v2624_v6  ;;  %645 = vmatpush.msra.mxu2 %v2624_v6 }
  0xad   : > { %625 = vmatpush.msra.mxu1 %v2624_v6  ;;  %665 = vmatpush.msra.mxu3 %v2624_v6 }
  0xae   : > { %606 = vmatpush.msra.mxu0 %v2624_v6  ;;  %646 = vmatpush.msra.mxu2 %v2624_v6 }
  0xaf   : > { %626 = vmatpush.msra.mxu1 %v2624_v6  ;;  %666 = vmatpush.msra.mxu3 %v2624_v6 }
  0xb0   : > { %671 = vmatpush.msrb.mxu0 %v2624_v6  ;;  %711 = vmatpush.msrb.mxu2 %v2624_v6 }
  0xb1   : > { %691 = vmatpush.msrb.mxu1 %v2624_v6  ;;  %731 = vmatpush.msrb.mxu3 %v2624_v6 }
  0xb2   : > { %672 = vmatpush.msrb.mxu0 %v2624_v6  ;;  %712 = vmatpush.msrb.mxu2 %v2624_v6 }
  0xb3   : > { %692 = vmatpush.msrb.mxu1 %v2624_v6  ;;  %732 = vmatpush.msrb.mxu3 %v2624_v6 }
  0xb4   : > { %673 = vmatpush.msrb.mxu0 %v2624_v6  ;;  %713 = vmatpush.msrb.mxu2 %v2624_v6 }
  0xb5   : > { %693 = vmatpush.msrb.mxu1 %v2624_v6  ;;  %733 = vmatpush.msrb.mxu3 %v2624_v6 }
  0xb6   : > { %674 = vmatpush.msrb.mxu0 %v2624_v6  ;;  %714 = vmatpush.msrb.mxu2 %v2624_v6 }
  0xb7   : > { %694 = vmatpush.msrb.mxu1 %v2624_v6  ;;  %734 = vmatpush.msrb.mxu3 %v2624_v6 }
  0xb8   : > { %675 = vmatpush.msrb.mxu0 %v2624_v6  ;;  %715 = vmatpush.msrb.mxu2 %v2624_v6 }
  0xb9   : > { %695 = vmatpush.msrb.mxu1 %v2624_v6  ;;  %735 = vmatpush.msrb.mxu3 %v2624_v6 }
  0xba   : > { %676 = vmatpush.msrb.mxu0 %v2624_v6  ;;  %716 = vmatpush.msrb.mxu2 %v2624_v6 }
  0xbb   : > { %696 = vmatpush.msrb.mxu1 %v2624_v6  ;;  %736 = vmatpush.msrb.mxu3 %v2624_v6 }
  0xbc   : > { %677 = vmatpush.msrb.mxu0 %v2624_v6  ;;  %717 = vmatpush.msrb.mxu2 %v2624_v6 }
  0xbd   : > { %697 = vmatpush.msrb.mxu1 %v2624_v6  ;;  %737 = vmatpush.msrb.mxu3 %v2624_v6 }
  0xbe   : > { %678 = vmatpush.msrb.mxu0 %v2624_v6  ;;  %718 = vmatpush.msrb.mxu2 %v2624_v6 }
  0xbf   : > { %698 = vmatpush.msrb.mxu1 %v2624_v6  ;;  %738 = vmatpush.msrb.mxu3 %v2624_v6 }
  0xc0   : > { %679 = vmatpush.msrb.mxu0 %v2624_v6  ;;  %719 = vmatpush.msrb.mxu2 %v2624_v6 }
  0xc1   : > { %699 = vmatpush.msrb.mxu1 %v2624_v6  ;;  %739 = vmatpush.msrb.mxu3 %v2624_v6 }
  0xc2   : > { %680 = vmatpush.msrb.mxu0 %v2624_v6  ;;  %720 = vmatpush.msrb.mxu2 %v2624_v6 }
  0xc3   : > { %700 = vmatpush.msrb.mxu1 %v2624_v6  ;;  %740 = vmatpush.msrb.mxu3 %v2624_v6 }
  0xc4   : > { %681 = vmatpush.msrb.mxu0 %v2624_v6  ;;  %721 = vmatpush.msrb.mxu2 %v2624_v6 }
  0xc5   : > { %701 = vmatpush.msrb.mxu1 %v2624_v6  ;;  %741 = vmatpush.msrb.mxu3 %v2624_v6 }
  0xc6   : > { %682 = vmatpush.msrb.mxu0 %v2624_v6  ;;  %722 = vmatpush.msrb.mxu2 %v2624_v6 }
  0xc7   : > { %647 = vmatmul.f32.vlgmr.msra.gmra.mxu2 %v585_v9  ;;  %702 = vmatpush.msrb.mxu1 %v2624_v6  ;;  %v775_v9 = vld [vmem:[%s2855_s30] sm:$0xff]  ;;  %s2562_s30 = sshra.s32 %s2092_s15, 4  ;;  %s2563_s30 = int_to_ptr.hbm [resolvable:$true] %s2562_s30 }
  0xc8   : > { %683 = vmatpush.msrb.mxu0 %v2624_v6  ;;  %723 = vmatpush.msrb.mxu2 %v2624_v6  ;;  %p2569_p11 = scmp.lt.s32.totalorder %s2563_s30, %s4109_s7 }
  0xc9   : > { %742 = vmatpush.msrb.mxu3 %v2624_v6  ;;  %607 = vmatmul.f32.vlgmr.msra.gmra.mxu0 %v583_v11 }
  0xca   : > { %667 = vmatmul.f32.vlgmr.msra.gmra.mxu3 %v586_v13  ;;  %684 = vmatpush.msrb.mxu0 %v2624_v6  ;;  %v3338_v13 = vmul.f32 0.33333334, %v775_v9 }
  0xcb   : > { %703 = vmatpush.msrb.mxu1 %v2624_v6  ;;  %724 = vmatpush.msrb.mxu2 %v2624_v6 }
  0xcc   : > { %743 = vmatpush.msrb.mxu3 %v2624_v6  ;;  %627 = vmatmul.f32.vlgmr.msra.gmra.mxu1 %v584_v14 }
  0xcd   : > { %685 = vmatpush.msrb.mxu0 %v2624_v6  ;;  %704 = vmatpush.msrb.mxu1 %v2624_v6 }
  0xce   : > { %725 = vmatpush.msrb.mxu2 %v2624_v6  ;;  %744 = vmatpush.msrb.mxu3 %v2624_v6 }
  0xcf   : > { %686 = vmatpush.msrb.mxu0 %v2624_v6  ;;  %705 = vmatpush.msrb.mxu1 %v2624_v6 }
  0xd0   : > { %726 = vmatpush.msrb.mxu2 %v2624_v6  ;;  %745 = vmatpush.msrb.mxu3 %v2624_v6 }
  0xd1   : > { %727 = vmatmul.f32.vlgmr.msrb.gmra.mxu2 %v589_v17  ;;  %823 = vmatpush.msra.mxu0 %v2624_v6 }
  0xd2   : > { %863 = vmatpush.msra.mxu2 %v2624_v6  ;;  %706 = vmatpush.msrb.mxu1 %v2624_v6 }
  0xd3   : > { %746 = vmatpush.msrb.mxu3 %v2624_v6  ;;  %687 = vmatmul.f32.vlgmr.msrb.gmra.mxu0 %v587_v19  ;;  %v1184_v19 = vld [vmem:[%s2861_s22] sm:$0xff] }
  0xd4   : > { %747 = vmatmul.f32.vlgmr.msrb.gmra.mxu3 %v590_v21  ;;  %824 = vmatpush.msra.mxu0 %v2624_v6 }
  0xd5   : > { %843 = vmatpush.msra.mxu1 %v2624_v6  ;;  %864 = vmatpush.msra.mxu2 %v2624_v6 }
  0xd6   : > { %883 = vmatpush.msra.mxu3 %v2624_v6  ;;  %707 = vmatmul.f32.vlgmr.msrb.gmra.mxu1 %v588_v22 }
  0xd7   : > { %825 = vmatpush.msra.mxu0 %v2624_v6  ;;  %844 = vmatpush.msra.mxu1 %v2624_v6 }
  0xd8   : > { %865 = vmatpush.msra.mxu2 %v2624_v6  ;;  %884 = vmatpush.msra.mxu3 %v2624_v6 }
  0xd9   : > { %826 = vmatpush.msra.mxu0 %v2624_v6  ;;  %845 = vmatpush.msra.mxu1 %v2624_v6 }
  0xda   : > { %866 = vmatpush.msra.mxu2 %v2624_v6  ;;  %885 = vmatpush.msra.mxu3 %v2624_v6 }
  0xdb   : > { %827 = vmatpush.msra.mxu0 %v2624_v6  ;;  %846 = vmatpush.msra.mxu1 %v2624_v6 }
  0xdc   : > { %867 = vmatpush.msra.mxu2 %v2624_v6  ;;  %886 = vmatpush.msra.mxu3 %v2624_v6 }
  0xdd   : > { %828 = vmatpush.msra.mxu0 %v2624_v6  ;;  %847 = vmatpush.msra.mxu1 %v2624_v6 }
  0xde   : > { %868 = vmatpush.msra.mxu2 %v2624_v6  ;;  %887 = vmatpush.msra.mxu3 %v2624_v6 }
  0xdf   : > { %829 = vmatpush.msra.mxu0 %v2624_v6  ;;  %848 = vmatpush.msra.mxu1 %v2624_v6 }
  0xe0   : > { %869 = vmatpush.msra.mxu2 %v2624_v6  ;;  %888 = vmatpush.msra.mxu3 %v2624_v6 }
  0xe1   : > { %830 = vmatpush.msra.mxu0 %v2624_v6  ;;  %849 = vmatpush.msra.mxu1 %v2624_v6 }
  0xe2   : > { %870 = vmatpush.msra.mxu2 %v2624_v6  ;;  %889 = vmatpush.msra.mxu3 %v2624_v6 }
  0xe3   : > { %831 = vmatpush.msra.mxu0 %v2624_v6  ;;  %850 = vmatpush.msra.mxu1 %v2624_v6 }
  0xe4   : > { %871 = vmatpush.msra.mxu2 %v2624_v6  ;;  %890 = vmatpush.msra.mxu3 %v2624_v6 }
  0xe5   : > { %832 = vmatpush.msra.mxu0 %v2624_v6  ;;  %851 = vmatpush.msra.mxu1 %v2624_v6 }
  0xe6   : > { %872 = vmatpush.msra.mxu2 %v2624_v6  ;;  %891 = vmatpush.msra.mxu3 %v2624_v6 }
  0xe7   : > { %833 = vmatpush.msra.mxu0 %v2624_v6  ;;  %852 = vmatpush.msra.mxu1 %v2624_v6 }
  0xe8   : > { %873 = vmatpush.msra.mxu2 %v2624_v6  ;;  %892 = vmatpush.msra.mxu3 %v2624_v6 }
  0xe9   : > { %834 = vmatpush.msra.mxu0 %v2624_v6  ;;  %853 = vmatpush.msra.mxu1 %v2624_v6 }
  0xea   : > { %874 = vmatpush.msra.mxu2 %v2624_v6  ;;  %893 = vmatpush.msra.mxu3 %v2624_v6 }
  0xeb   : > { %835 = vmatpush.msra.mxu0 %v2624_v6  ;;  %854 = vmatpush.msra.mxu1 %v2624_v6 }
  0xec   : > { %875 = vmatpush.msra.mxu2 %v2624_v6  ;;  %894 = vmatpush.msra.mxu3 %v2624_v6 }
  0xed   : > { %836 = vmatpush.msra.mxu0 %v2624_v6  ;;  %855 = vmatpush.msra.mxu1 %v2624_v6 }
  0xee   : > { %876 = vmatpush.msra.mxu2 %v2624_v6  ;;  %895 = vmatpush.msra.mxu3 %v2624_v6 }
  0xef   : > { %837 = vmatpush.msra.mxu0 %v2624_v6  ;;  %856 = vmatpush.msra.mxu1 %v2624_v6 }
  0xf0   : > { %877 = vmatpush.msra.mxu2 %v2624_v6  ;;  %896 = vmatpush.msra.mxu3 %v2624_v6 }
  0xf1   : > { %838 = vmatpush.msra.mxu0 %v2624_v6  ;;  %857 = vmatpush.msra.mxu1 %v2624_v6 }
  0xf2   : > { %878 = vmatpush.msra.mxu2 %v2624_v6  ;;  %897 = vmatpush.msra.mxu3 %v2624_v6 }
  0xf3   : > { %903 = vmatpush.msrb.mxu0 %v2624_v6  ;;  %858 = vmatpush.msra.mxu1 %v2624_v6 }
  0xf4   : > { %943 = vmatpush.msrb.mxu2 %v2624_v6  ;;  %898 = vmatpush.msra.mxu3 %v2624_v6 }
  0xf5   : > { %904 = vmatpush.msrb.mxu0 %v2624_v6  ;;  %923 = vmatpush.msrb.mxu1 %v2624_v6 }
  0xf6   : > { %944 = vmatpush.msrb.mxu2 %v2624_v6  ;;  %963 = vmatpush.msrb.mxu3 %v2624_v6 }
  0xf7   : > { %905 = vmatpush.msrb.mxu0 %v2624_v6  ;;  %924 = vmatpush.msrb.mxu1 %v2624_v6 }
  0xf8   : > { %945 = vmatpush.msrb.mxu2 %v2624_v6  ;;  %964 = vmatpush.msrb.mxu3 %v2624_v6 }
  0xf9   : > { %906 = vmatpush.msrb.mxu0 %v2624_v6  ;;  %925 = vmatpush.msrb.mxu1 %v2624_v6 }
  0xfa   : > { %946 = vmatpush.msrb.mxu2 %v2624_v6  ;;  %965 = vmatpush.msrb.mxu3 %v2624_v6 }
  0xfb   : > { %907 = vmatpush.msrb.mxu0 %v2624_v6  ;;  %926 = vmatpush.msrb.mxu1 %v2624_v6 }
  0xfc   : > { %947 = vmatpush.msrb.mxu2 %v2624_v6  ;;  %966 = vmatpush.msrb.mxu3 %v2624_v6 }
  0xfd   : > { %908 = vmatpush.msrb.mxu0 %v2624_v6  ;;  %927 = vmatpush.msrb.mxu1 %v2624_v6 }
  0xfe   : > { %948 = vmatpush.msrb.mxu2 %v2624_v6  ;;  %967 = vmatpush.msrb.mxu3 %v2624_v6 }
  0xff   : > { %909 = vmatpush.msrb.mxu0 %v2624_v6  ;;  %928 = vmatpush.msrb.mxu1 %v2624_v6 }
 0x100   : > { %949 = vmatpush.msrb.mxu2 %v2624_v6  ;;  %968 = vmatpush.msrb.mxu3 %v2624_v6 }
 0x101   : > { %910 = vmatpush.msrb.mxu0 %v2624_v6  ;;  %929 = vmatpush.msrb.mxu1 %v2624_v6 }
 0x102   : > { %950 = vmatpush.msrb.mxu2 %v2624_v6  ;;  %969 = vmatpush.msrb.mxu3 %v2624_v6 }
 0x103   : > { %911 = vmatpush.msrb.mxu0 %v2624_v6  ;;  %930 = vmatpush.msrb.mxu1 %v2624_v6 }
 0x104   : > { %951 = vmatpush.msrb.mxu2 %v2624_v6  ;;  %970 = vmatpush.msrb.mxu3 %v2624_v6 }
 0x105   : > { %912 = vmatpush.msrb.mxu0 %v2624_v6  ;;  %931 = vmatpush.msrb.mxu1 %v2624_v6 }
 0x106   : > { %952 = vmatpush.msrb.mxu2 %v2624_v6  ;;  %971 = vmatpush.msrb.mxu3 %v2624_v6 }
 0x107   : > { %913 = vmatpush.msrb.mxu0 %v2624_v6  ;;  %932 = vmatpush.msrb.mxu1 %v2624_v6 }
 0x108   : > { %953 = vmatpush.msrb.mxu2 %v2624_v6  ;;  %972 = vmatpush.msrb.mxu3 %v2624_v6 }
 0x109   : > { %879 = vmatmul.f32.vlgmr.msra.gmra.mxu2 %v817_v25  ;;  %914 = vmatpush.msrb.mxu0 %v2624_v6  ;;  %v3342_v25 = vmul.f32 0.33333334, %v1184_v19  ;;  %v3499_v19 = vld [vmem:[%s2867_s14 + $0x10] sm:$0xff] }
 0x10a   : > { %933 = vmatpush.msrb.mxu1 %v2624_v6  ;;  %954 = vmatpush.msrb.mxu2 %v2624_v6 }
 0x10b   : > { %973 = vmatpush.msrb.mxu3 %v2624_v6  ;;  %839 = vmatmul.f32.vlgmr.msra.gmra.mxu0 %v815_v27 }
 0x10c   : > { %899 = vmatmul.f32.vlgmr.msra.gmra.mxu3 %v818_v29  ;;  %915 = vmatpush.msrb.mxu0 %v2624_v6 }
 0x10d   : > { %934 = vmatpush.msrb.mxu1 %v2624_v6  ;;  %955 = vmatpush.msrb.mxu2 %v2624_v6 }
 0x10e   : > { %974 = vmatpush.msrb.mxu3 %v2624_v6  ;;  %859 = vmatmul.f32.vlgmr.msra.gmra.mxu1 %v816_v30 }
 0x10f   : > { %916 = vmatpush.msrb.mxu0 %v2624_v6  ;;  %935 = vmatpush.msrb.mxu1 %v2624_v6 }
 0x110   : > { %956 = vmatpush.msrb.mxu2 %v2624_v6  ;;  %975 = vmatpush.msrb.mxu3 %v2624_v6 }
 0x111   : > { %917 = vmatpush.msrb.mxu0 %v2624_v6  ;;  %936 = vmatpush.msrb.mxu1 %v2624_v6 }
 0x112   : > { %957 = vmatpush.msrb.mxu2 %v2624_v6  ;;  %976 = vmatpush.msrb.mxu3 %v2624_v6 }
 0x113   : > { %918 = vmatpush.msrb.mxu0 %v2624_v6  ;;  %937 = vmatpush.msrb.mxu1 %v2624_v6 }
 0x114   : > { %958 = vmatpush.msrb.mxu2 %v2624_v6  ;;  %977 = vmatpush.msrb.mxu3 %v2624_v6 }
 0x115   : > { %919 = vmatmul.f32.vlgmr.msrb.gmra.mxu0 %v819_v35  ;;  %959 = vmatmul.f32.vlgmr.msrb.gmra.mxu2 %v821_v36 }
 0x116   : > { %938 = vmatpush.msrb.mxu1 %v2624_v6  ;;  %978 = vmatpush.msrb.mxu3 %v2624_v6 }
 0x117   : > { %939 = vmatmul.f32.vlgmr.msrb.gmra.mxu1 %v820_v37  ;;  %979 = vmatmul.f32.vlgmr.msrb.gmra.mxu3 %v822_v38 }
 0x118   : > { %1023 = vmatpush.msra.mxu0 %v2624_v6  ;;  %1063 = vmatpush.msra.mxu2 %v2624_v6 }
 0x119   : > { %1043 = vmatpush.msra.mxu1 %v2624_v6  ;;  %1083 = vmatpush.msra.mxu3 %v2624_v6 }
 0x11a   : > { %1024 = vmatpush.msra.mxu0 %v2624_v6  ;;  %1064 = vmatpush.msra.mxu2 %v2624_v6 }
 0x11b   : > { %1044 = vmatpush.msra.mxu1 %v2624_v6  ;;  %1084 = vmatpush.msra.mxu3 %v2624_v6 }
 0x11c   : > { %1025 = vmatpush.msra.mxu0 %v2624_v6  ;;  %1065 = vmatpush.msra.mxu2 %v2624_v6 }
 0x11d   : > { %1045 = vmatpush.msra.mxu1 %v2624_v6  ;;  %1085 = vmatpush.msra.mxu3 %v2624_v6 }
 0x11e   : > { %1026 = vmatpush.msra.mxu0 %v2624_v6  ;;  %1066 = vmatpush.msra.mxu2 %v2624_v6 }
 0x11f   : > { %1046 = vmatpush.msra.mxu1 %v2624_v6  ;;  %1086 = vmatpush.msra.mxu3 %v2624_v6 }
 0x120   : > { %1027 = vmatpush.msra.mxu0 %v2624_v6  ;;  %1067 = vmatpush.msra.mxu2 %v2624_v6 }
 0x121   : > { %1047 = vmatpush.msra.mxu1 %v2624_v6  ;;  %1087 = vmatpush.msra.mxu3 %v2624_v6 }
 0x122   : > { %1028 = vmatpush.msra.mxu0 %v2624_v6  ;;  %1068 = vmatpush.msra.mxu2 %v2624_v6 }
 0x123   : > { %1048 = vmatpush.msra.mxu1 %v2624_v6  ;;  %1088 = vmatpush.msra.mxu3 %v2624_v6 }
 0x124   : > { %1029 = vmatpush.msra.mxu0 %v2624_v6  ;;  %1069 = vmatpush.msra.mxu2 %v2624_v6 }
 0x125   : > { %1049 = vmatpush.msra.mxu1 %v2624_v6  ;;  %1089 = vmatpush.msra.mxu3 %v2624_v6 }
 0x126   : > { %1030 = vmatpush.msra.mxu0 %v2624_v6  ;;  %1070 = vmatpush.msra.mxu2 %v2624_v6 }
 0x127   : > { %1050 = vmatpush.msra.mxu1 %v2624_v6  ;;  %1090 = vmatpush.msra.mxu3 %v2624_v6 }
 0x128   : > { %1031 = vmatpush.msra.mxu0 %v2624_v6  ;;  %1071 = vmatpush.msra.mxu2 %v2624_v6 }
 0x129   : > { %1051 = vmatpush.msra.mxu1 %v2624_v6  ;;  %1091 = vmatpush.msra.mxu3 %v2624_v6 }
 0x12a   : > { %1032 = vmatpush.msra.mxu0 %v2624_v6  ;;  %1072 = vmatpush.msra.mxu2 %v2624_v6 }
 0x12b   : > { %1052 = vmatpush.msra.mxu1 %v2624_v6  ;;  %1092 = vmatpush.msra.mxu3 %v2624_v6 }
 0x12c   : > { %1033 = vmatpush.msra.mxu0 %v2624_v6  ;;  %1073 = vmatpush.msra.mxu2 %v2624_v6 }
 0x12d   : > { %1053 = vmatpush.msra.mxu1 %v2624_v6  ;;  %1093 = vmatpush.msra.mxu3 %v2624_v6 }
 0x12e   : > { %1034 = vmatpush.msra.mxu0 %v2624_v6  ;;  %1074 = vmatpush.msra.mxu2 %v2624_v6 }
 0x12f   : > { %1054 = vmatpush.msra.mxu1 %v2624_v6  ;;  %1094 = vmatpush.msra.mxu3 %v2624_v6 }
 0x130   : > { %1035 = vmatpush.msra.mxu0 %v2624_v6  ;;  %1075 = vmatpush.msra.mxu2 %v2624_v6 }
 0x131   : > { %1055 = vmatpush.msra.mxu1 %v2624_v6  ;;  %1095 = vmatpush.msra.mxu3 %v2624_v6 }
 0x132   : > { %1036 = vmatpush.msra.mxu0 %v2624_v6  ;;  %1076 = vmatpush.msra.mxu2 %v2624_v6 }
 0x133   : > { %1056 = vmatpush.msra.mxu1 %v2624_v6  ;;  %1096 = vmatpush.msra.mxu3 %v2624_v6 }
 0x134   : > { %1037 = vmatpush.msra.mxu0 %v2624_v6  ;;  %1077 = vmatpush.msra.mxu2 %v2624_v6 }
 0x135   : > { %1057 = vmatpush.msra.mxu1 %v2624_v6  ;;  %1097 = vmatpush.msra.mxu3 %v2624_v6 }
 0x136   : > { %1038 = vmatpush.msra.mxu0 %v2624_v6  ;;  %1078 = vmatpush.msra.mxu2 %v2624_v6 }
 0x137   : > { %1058 = vmatpush.msra.mxu1 %v2624_v6  ;;  %1098 = vmatpush.msra.mxu3 %v2624_v6 }
 0x138   : > { %1103 = vmatpush.msrb.mxu0 %v2624_v6  ;;  %1143 = vmatpush.msrb.mxu2 %v2624_v6 }
 0x139   : > { %1123 = vmatpush.msrb.mxu1 %v2624_v6  ;;  %1163 = vmatpush.msrb.mxu3 %v2624_v6 }
 0x13a   : > { %1104 = vmatpush.msrb.mxu0 %v2624_v6  ;;  %1144 = vmatpush.msrb.mxu2 %v2624_v6 }
 0x13b   : > { %1124 = vmatpush.msrb.mxu1 %v2624_v6  ;;  %1164 = vmatpush.msrb.mxu3 %v2624_v6 }
 0x13c   : > { %1105 = vmatpush.msrb.mxu0 %v2624_v6  ;;  %1145 = vmatpush.msrb.mxu2 %v2624_v6 }
 0x13d   : > { %1125 = vmatpush.msrb.mxu1 %v2624_v6  ;;  %1165 = vmatpush.msrb.mxu3 %v2624_v6 }
 0x13e   : > { %1106 = vmatpush.msrb.mxu0 %v2624_v6  ;;  %1146 = vmatpush.msrb.mxu2 %v2624_v6 }
 0x13f   : > { %1126 = vmatpush.msrb.mxu1 %v2624_v6  ;;  %1166 = vmatpush.msrb.mxu3 %v2624_v6 }
 0x140   : > { %1107 = vmatpush.msrb.mxu0 %v2624_v6  ;;  %1147 = vmatpush.msrb.mxu2 %v2624_v6 }
 0x141   : > { %1127 = vmatpush.msrb.mxu1 %v2624_v6  ;;  %1167 = vmatpush.msrb.mxu3 %v2624_v6 }
 0x142   : > { %1108 = vmatpush.msrb.mxu0 %v2624_v6  ;;  %1148 = vmatpush.msrb.mxu2 %v2624_v6 }
 0x143   : > { %1128 = vmatpush.msrb.mxu1 %v2624_v6  ;;  %1168 = vmatpush.msrb.mxu3 %v2624_v6 }
 0x144   : > { %1109 = vmatpush.msrb.mxu0 %v2624_v6  ;;  %1149 = vmatpush.msrb.mxu2 %v2624_v6 }
 0x145   : > { %1129 = vmatpush.msrb.mxu1 %v2624_v6  ;;  %2380 = vset.pattern.permute.xlu0 %v2625_v40 }
 0x146   : > { %1110 = vmatpush.msrb.mxu0 %v2624_v6  ;;  %v608_v39 = vpop.f32.mrf.mxu0  ;;  %1150 = vmatpush.msrb.mxu2 %v2624_v6 }
 0x147   : > { %1169 = vmatpush.msrb.mxu3 %v2624_v6  ;;  %1130 = vmatpush.msrb.mxu1 %v2624_v6 }
 0x148   : > { %1111 = vmatpush.msrb.mxu0 %v2624_v6  ;;  %1151 = vmatpush.msrb.mxu2 %v2624_v6 }
 0x149   : > { %v628_v41 = vpop.f32.mrf.mxu1  ;;  %1170 = vmatpush.msrb.mxu3 %v2624_v6  ;;  %1131 = vmatpush.msrb.mxu1 %v2624_v6 }
 0x14a   : > { %1112 = vmatpush.msrb.mxu0 %v2624_v6  ;;  %v629_v42 = vadd.f32 %v628_v41, %v608_v39  ;;  %v648_v43 = vpop.f32.mrf.mxu2  ;;  %1152 = vmatpush.msrb.mxu2 %v2624_v6 }
 0x14b   : > { %1171 = vmatpush.msrb.mxu3 %v2624_v6  ;;  %1132 = vmatpush.msrb.mxu1 %v2624_v6 }
 0x14c   : > { %1113 = vmatpush.msrb.mxu0 %v2624_v6  ;;  %v649_v44 = vadd.f32 %v648_v43, %v629_v42  ;;  %1153 = vmatpush.msrb.mxu2 %v2624_v6  ;;  %v2305_v43 = vld [vmem:[%s2861_s22 + $0x8] sm:$0xff] }
 0x14d   : > { %v668_v45 = vpop.f32.mrf.mxu3  ;;  %1172 = vmatpush.msrb.mxu3 %v2624_v6  ;;  %1133 = vmatpush.msrb.mxu1 %v2624_v6 }
 0x14e   : > { %1114 = vmatpush.msrb.mxu0 %v2624_v6  ;;  %v669_v46 = vadd.f32 %v668_v45, %v649_v44  ;;  %1154 = vmatpush.msrb.mxu2 %v2624_v6  ;;  %v3346_v44 = vmul.f32 0.33333334, %v2305_v43 }
 0x14f   : > { %1173 = vmatpush.msrb.mxu3 %v2624_v6  ;;  %1134 = vmatpush.msrb.mxu1 %v2624_v6 }
 0x150   : > { %1115 = vmatpush.msrb.mxu0 %v2624_v6  ;;  %v688_v47 = vpop.f32.mrf.mxu0  ;;  %1155 = vmatpush.msrb.mxu2 %v2624_v6 }
 0x151   : > { %v689_v48 = vadd.f32 %v688_v47, %v669_v46  ;;  %1174 = vmatpush.msrb.mxu3 %v2624_v6  ;;  %1135 = vmatpush.msrb.mxu1 %v2624_v6 }
 0x152   : > { %1116 = vmatpush.msrb.mxu0 %v2624_v6  ;;  %1156 = vmatpush.msrb.mxu2 %v2624_v6 }
 0x153   : > { %v708_v49 = vpop.f32.mrf.mxu1  ;;  %1175 = vmatpush.msrb.mxu3 %v2624_v6  ;;  %1136 = vmatpush.msrb.mxu1 %v2624_v6 }
 0x154   : > { %1117 = vmatpush.msrb.mxu0 %v2624_v6  ;;  %v709_v50 = vadd.f32 %v708_v49, %v689_v48  ;;  %v728_v51 = vpop.f32.mrf.mxu2  ;;  %1157 = vmatpush.msrb.mxu2 %v2624_v6 }
 0x155   : > { %1176 = vmatpush.msrb.mxu3 %v2624_v6  ;;  %1137 = vmatpush.msrb.mxu1 %v2624_v6 }
 0x156   : > { %1118 = vmatpush.msrb.mxu0 %v2624_v6  ;;  %v729_v52 = vadd.f32 %v728_v51, %v709_v50  ;;  %1158 = vmatpush.msrb.mxu2 %v2624_v6 }
 0x157   : > { %v748_v53 = vpop.f32.mrf.mxu3  ;;  %1177 = vmatpush.msrb.mxu3 %v2624_v6  ;;  %2381 = vset.pattern.permute.xlu1 %v2625_v40 }
 0x158   : > { %v749_v54 = vadd.f32 %v748_v53, %v729_v52  ;;  %1138 = vmatpush.msrb.mxu1 %v2624_v6  ;;  %777 = vmax.xlane.f32.xlu2 %v3338_v13 }
 0x159   : > { %1178 = vmatpush.msrb.mxu3 %v2624_v6 }
 0x15a   : > { %v751_v55 = vmax.f32 %v749_v54, 1e-24 }
 0x15c   : > { %2382 = vrsqrt.f32 %v751_v55  ;;  %vm758_vm0 = vweird.f32 %v751_v55 }
 0x160   : > { %1186 = vmax.xlane.f32.xlu2 %v3342_v25 }
 0x162   : > { %v2383_v56 = vpop.eup %2382 }
 0x163   : > { %v753_v57 = vmul.f32 %v2383_v56, %v751_v55  ;;  %vm759_vm1 = vweird.f32 %v2383_v56 }
 0x164   : > { %vm760_vm2 = vmor %vm758_vm0, %vm759_vm1 }
 0x165   : > { %v754_v58 = vmul.f32 %v2383_v56, %v753_v57 }
 0x167   : > { %v755_v59 = vmul.f32 0.5, %v754_v58 }
 0x169   : > { %v756_v60 = vsub.f32 1.5, %v755_v59 }
 0x16b   : > { %v757_v61 = vmul.f32 %v2383_v56, %v756_v60 }
 0x16d   : > { %v761_v62 = vsel %vm760_vm2, %v2383_v56, %v757_v61 }
 0x16e   : > { %764 = vperm.xlu0 %2380, %v761_v62  }
 0x188   : > { %v840_v63 = vpop.f32.mrf.mxu0 }
 0x18b   : > { %v860_v0 = vpop.f32.mrf.mxu1 }
 0x18c   : > { %v861_v1 = vadd.f32 %v860_v0, %v840_v63  ;;  %v880_v2 = vpop.f32.mrf.mxu2 }
 0x18e   : > { %v881_v3 = vadd.f32 %v880_v2, %v861_v1 }
 0x18f   : > { %v900_v4 = vpop.f32.mrf.mxu3 }
 0x190   : > { %v901_v5 = vadd.f32 %v900_v4, %v881_v3 }
 0x192   : > { %v920_v11 = vpop.f32.mrf.mxu0 }
 0x193   : > { %v921_v14 = vadd.f32 %v920_v11, %v901_v5 }
 0x194   : > { %v940_v17 = vpop.f32.mrf.mxu1 }
 0x195   : > { %v941_v21 = vadd.f32 %v940_v17, %v921_v14 }
 0x198   : > { %v960_v22 = vpop.f32.mrf.mxu2 }
 0x199   : > { %v961_v27 = vadd.f32 %v960_v22, %v941_v21  ;;  %v1240_v21 = vmul.f32 %v3499_v19, %v3499_v19  ;;  %v3509_v22 = vld [vmem:[%s2867_s14] sm:$0xff] }
 0x19a   : > { %v980_v29 = vpop.f32.mrf.mxu3 }
 0x19b   : > { %v981_v30 = vadd.f32 %v980_v29, %v961_v27  ;;  %v1238_v27 = vmul.f32 %v3509_v22, %v3509_v22 }
 0x19d   : > { %v983_v35 = vmax.f32 %v981_v30, 1e-24  ;;  %v3525_v30 = vld [vmem:[%s2867_s14 + $0x8] sm:$0xff] }
 0x19f   : > { %2384 = vrsqrt.f32 %v983_v35  ;;  %vm990_vm4 = vweird.f32 %v983_v35 }
 0x1a5   : > { %v2385_v36 = vpop.eup %2384 }
 0x1a6   : > { %v985_v37 = vmul.f32 %v2385_v36, %v983_v35  ;;  %vm991_vm3 = vweird.f32 %v2385_v36  ;;  %v1239_v35 = vmul.f32 %v3525_v30, %v3525_v30 }
 0x1a7   : > { %vm992_vm5 = vmor %vm990_vm4, %vm991_vm3 }
 0x1a8   : > { %v986_v38 = vmul.f32 %v2385_v36, %v985_v37  ;;  %v3543_v37 = vld [vmem:[%s2867_s14 + $0x30] sm:$0xff] }
 0x1aa   : > { %v987_v39 = vmul.f32 0.5, %v986_v38  ;;  %v3548_v38 = vld [vmem:[%s2867_s14 + $0x28] sm:$0xff] }
 0x1ac   : > { %v988_v40 = vsub.f32 1.5, %v987_v39 }
 0x1ae   : > { %v989_v41 = vmul.f32 %v2385_v36, %v988_v40  ;;  %v3555_v40 = vld [vmem:[%s2867_s14 + $0x38] sm:$0xff] }
 0x1af   : > { %v1245_v43 = vmul.f32 %v3555_v40, %v3555_v40 }
 0x1b0   : > { %v993_v42 = vsel %vm992_vm5, %v2385_v36, %v989_v41  ;;  %v3539_v36 = vld [vmem:[%s2867_s14 + $0x20] sm:$0xff]  ;;  %v1244_v41 = vmul.f32 %v3543_v37, %v3543_v37 }
 0x1b1   : > { %996 = vperm.xlu0 %2380, %v993_v42   ;;  %v1242_v39 = vmul.f32 %v3539_v36, %v3539_v36  ;;  %v1243_v42 = vmul.f32 %v3548_v38, %v3548_v38 }
 0x1cb   : > { %v778_v63 = vpop.xlane.xlu2 %777 }
 0x1cc   : > { %v3422_v0 = vsub.f32 %v3338_v13, %v778_v63 }
 0x1ce   : > { %v780_v1 = vmul.f32 1.442695, %v3422_v0 }
 0x1d0   : > { %2386 = vpow2.f32 %v780_v1 }
 0x1d3   : > { %v1187_v2 = vpop.xlane.xlu2 %1186 }
 0x1d4   : > { %v3444_v3 = vsub.f32 %v3342_v25, %v1187_v2  ;;  %v3512_v25 = vld [vmem:[%s2867_s14 + $0x18] sm:$0xff] }
 0x1d5   : > { %v1241_v29 = vmul.f32 %v3512_v25, %v3512_v25 }
 0x1d6   : > { %v1189_v4 = vmul.f32 1.442695, %v3444_v3  ;;  %v3455_v5 = vpop.eup %2386 }
 0x1d7   : > { %782 = vadd.xlane.f32.xlu2 %v3455_v5 }
 0x1d8   : > { %2388 = vpow2.f32 %v1189_v4 }
 0x1db   : > { %1610 = vmax.xlane.f32.xlu0 %v3346_v44 }
 0x1de   : > { %v2389_v14 = vpop.eup %2388 }
 0x1df   : > { %1191 = vadd.xlane.f32.xlu2 %v2389_v14 }
 0x1e0   : > { %v765_v45 = vpop.permute.xlu0 %764 }
 0x1e1   : > { %v3350_v47 = vmul.f32 %v765_v45, %v2979_v8  ;;  %v3353_v48 = vmul.f32 %v765_v45, %v2995_v12  ;;  %v3356_v49 = vmul.f32 %v765_v45, %v2972_v7  ;;  %v3359_v50 = vmul.f32 %v765_v45, %v2986_v10 }
 0x1e2   : > { %v3374_v59 = vmul.f32 %v765_v45, %v3015_v16  ;;  %v3377_v60 = vmul.f32 %v765_v45, %v3031_v20 }
 0x223   : > { %v997_v46 = vpop.permute.xlu0 %996 }
 0x224   : > { %v999_v51 = vmul.f32 %v997_v46, %v3143_v24  ;;  %v1000_v52 = vmul.f32 %v997_v46, %v3159_v28  ;;  %v1001_v53 = vmul.f32 %v997_v46, %v3136_v23  ;;  %v1002_v54 = vmul.f32 %v997_v46, %v3150_v26 }
 0x225   : > { %v1003_v24 = vmul.f32 %v997_v46, %v3176_v31  ;;  %v1004_v28 = vmul.f32 %v997_v46, %v3186_v33  ;;  %v1005_v23 = vmul.f32 %v997_v46, %v3179_v32  ;;  %v1006_v26 = vmul.f32 %v997_v46, %v3189_v34 }
 0x226   : > { %v1007_v8 = vsub.f32 %v999_v51, %v3350_v47  ;;  %v1008_v55 = vsub.f32 %v1000_v52, %v3353_v48  ;;  %v1009_v12 = vsub.f32 %v1001_v53, %v3356_v49  ;;  %v1010_v7 = vsub.f32 %v1002_v54, %v3359_v50 }
 0x227   : > { %v3382_v31 = vmul.f32 %v765_v45, %v3009_v15  ;;  %v3385_v33 = vmul.f32 %v765_v45, %v3022_v18  ;;  %v1011_v16 = vsub.f32 %v1003_v24, %v3374_v59  ;;  %v1012_v32 = vsub.f32 %v1004_v28, %v3377_v60 }
 0x228   : > { %v1015_v56 = vand.u32 2147483647, %v1007_v8  ;;  %v1016_v57 = vand.u32 2147483647, %v1008_v55  ;;  %v1017_v10 = vand.u32 2147483647, %v1009_v12 }
 0x229   : > { %v1018_v58 = vand.u32 2147483647, %v1010_v7  ;;  %v1013_v20 = vsub.f32 %v1005_v23, %v3382_v31  ;;  %v1014_v15 = vsub.f32 %v1006_v26, %v3385_v33  ;;  %v1019_v18 = vand.u32 2147483647, %v1011_v16 }
 0x22a   : > { %1039 = vmatmul.f32.vlgmr.msra.gmra.mxu0 %v1015_v56  ;;  %1059 = vmatmul.f32.vlgmr.msra.gmra.mxu1 %v1016_v57  ;;  %v1020_v34 = vand.u32 2147483647, %v1012_v32 }
 0x22b   : > { %1079 = vmatmul.f32.vlgmr.msra.gmra.mxu2 %v1017_v10  ;;  %1099 = vmatmul.f32.vlgmr.msra.gmra.mxu3 %v1018_v58  ;;  %v1021_v61 = vand.u32 2147483647, %v1013_v20  ;;  %v1022_v62 = vand.u32 2147483647, %v1014_v15 }
 0x22c   : > { %1246 = vmatpush.msra.mxu0 %v2624_v6  ;;  %1286 = vmatpush.msra.mxu2 %v2624_v6 }
 0x22d   : > { %1266 = vmatpush.msra.mxu1 %v2624_v6  ;;  %1306 = vmatpush.msra.mxu3 %v2624_v6 }
 0x22e   : > { %1247 = vmatpush.msra.mxu0 %v2624_v6  ;;  %1287 = vmatpush.msra.mxu2 %v2624_v6 }
 0x22f   : > { %1267 = vmatpush.msra.mxu1 %v2624_v6  ;;  %1307 = vmatpush.msra.mxu3 %v2624_v6 }
 0x230   : > { %1248 = vmatpush.msra.mxu0 %v2624_v6  ;;  %1288 = vmatpush.msra.mxu2 %v2624_v6 }
 0x231   : > { %1268 = vmatpush.msra.mxu1 %v2624_v6  ;;  %1308 = vmatpush.msra.mxu3 %v2624_v6 }
 0x232   : > { %1249 = vmatpush.msra.mxu0 %v2624_v6  ;;  %1289 = vmatpush.msra.mxu2 %v2624_v6 }
 0x233   : > { %1119 = vmatmul.f32.vlgmr.msrb.gmra.mxu0 %v1019_v18  ;;  %1139 = vmatmul.f32.vlgmr.msrb.gmra.mxu1 %v1020_v34 }
 0x234   : > { %1159 = vmatmul.f32.vlgmr.msrb.gmra.mxu2 %v1021_v61  ;;  %1179 = vmatmul.f32.vlgmr.msrb.gmra.mxu3 %v1022_v62 }
 0x235   : > { %1250 = vmatpush.msra.mxu0 %v2624_v6  ;;  %1269 = vmatpush.msra.mxu1 %v2624_v6 }
 0x236   : > { %1290 = vmatpush.msra.mxu2 %v2624_v6  ;;  %1309 = vmatpush.msra.mxu3 %v2624_v6 }
 0x237   : > { %1251 = vmatpush.msra.mxu0 %v2624_v6  ;;  %1270 = vmatpush.msra.mxu1 %v2624_v6 }
 0x238   : > { %1291 = vmatpush.msra.mxu2 %v2624_v6  ;;  %1310 = vmatpush.msra.mxu3 %v2624_v6 }
 0x239   : > { %1252 = vmatpush.msra.mxu0 %v2624_v6  ;;  %1271 = vmatpush.msra.mxu1 %v2624_v6 }
 0x23a   : > { %1292 = vmatpush.msra.mxu2 %v2624_v6  ;;  %1311 = vmatpush.msra.mxu3 %v2624_v6 }
 0x23b   : > { %1253 = vmatpush.msra.mxu0 %v2624_v6  ;;  %1272 = vmatpush.msra.mxu1 %v2624_v6 }
 0x23c   : > { %1293 = vmatpush.msra.mxu2 %v2624_v6  ;;  %1312 = vmatpush.msra.mxu3 %v2624_v6 }
 0x23d   : > { %1254 = vmatpush.msra.mxu0 %v2624_v6  ;;  %1273 = vmatpush.msra.mxu1 %v2624_v6 }
 0x23e   : > { %1294 = vmatpush.msra.mxu2 %v2624_v6  ;;  %1313 = vmatpush.msra.mxu3 %v2624_v6 }
 0x23f   : > { %1255 = vmatpush.msra.mxu0 %v2624_v6  ;;  %1274 = vmatpush.msra.mxu1 %v2624_v6 }
 0x240   : > { %1295 = vmatpush.msra.mxu2 %v2624_v6  ;;  %1314 = vmatpush.msra.mxu3 %v2624_v6 }
 0x241   : > { %1256 = vmatpush.msra.mxu0 %v2624_v6  ;;  %1275 = vmatpush.msra.mxu1 %v2624_v6 }
 0x242   : > { %1296 = vmatpush.msra.mxu2 %v2624_v6  ;;  %1315 = vmatpush.msra.mxu3 %v2624_v6 }
 0x243   : > { %1257 = vmatpush.msra.mxu0 %v2624_v6  ;;  %1276 = vmatpush.msra.mxu1 %v2624_v6 }
 0x244   : > { %1297 = vmatpush.msra.mxu2 %v2624_v6  ;;  %1316 = vmatpush.msra.mxu3 %v2624_v6 }
 0x245   : > { %1258 = vmatpush.msra.mxu0 %v2624_v6  ;;  %1277 = vmatpush.msra.mxu1 %v2624_v6 }
 0x246   : > { %1298 = vmatpush.msra.mxu2 %v2624_v6  ;;  %1317 = vmatpush.msra.mxu3 %v2624_v6 }
 0x247   : > { %1259 = vmatpush.msra.mxu0 %v2624_v6  ;;  %1278 = vmatpush.msra.mxu1 %v2624_v6 }
 0x248   : > { %1299 = vmatpush.msra.mxu2 %v2624_v6  ;;  %1318 = vmatpush.msra.mxu3 %v2624_v6 }
 0x249   : > { %1260 = vmatpush.msra.mxu0 %v2624_v6  ;;  %1279 = vmatpush.msra.mxu1 %v2624_v6 }
 0x24a   : > { %1300 = vmatpush.msra.mxu2 %v2624_v6  ;;  %1319 = vmatpush.msra.mxu3 %v2624_v6 }
 0x24b   : > { %1261 = vmatpush.msra.mxu0 %v2624_v6  ;;  %1280 = vmatpush.msra.mxu1 %v2624_v6 }
 0x24c   : > { %1301 = vmatpush.msra.mxu2 %v2624_v6  ;;  %1320 = vmatpush.msra.mxu3 %v2624_v6 }
 0x24d   : > { %1326 = vmatpush.msrb.mxu0 %v2624_v6  ;;  %1281 = vmatpush.msra.mxu1 %v2624_v6 }
 0x24e   : > { %1366 = vmatpush.msrb.mxu2 %v2624_v6  ;;  %v1611_v9 = vpop.xlane.xlu0 %1610  ;;  %1321 = vmatpush.msra.mxu3 %v2624_v6 }
 0x24f   : > { %1327 = vmatpush.msrb.mxu0 %v2624_v6  ;;  %v3468_v11 = vsub.f32 %v3346_v44, %v1611_v9  ;;  %1346 = vmatpush.msrb.mxu1 %v2624_v6  ;;  %v3700_v44 = vpop.xlane.xlu2 %782 }
 0x250   : > { %1367 = vmatpush.msrb.mxu2 %v2624_v6  ;;  %1386 = vmatpush.msrb.mxu3 %v2624_v6  ;;  %vm792_vm6 = vweird.f32 %v3700_v44  ;;  %v798_v24 = vand.u32 2147483648, %v3700_v44  ;;  %v796_v23 = vand.u32 2147483647, %v3700_v44 }
 0x251   : > { %1328 = vmatpush.msrb.mxu0 %v2624_v6  ;;  %1347 = vmatpush.msrb.mxu1 %v2624_v6  ;;  %v1613_v13 = vmul.f32 1.442695, %v3468_v11 }
 0x252   : > { %1368 = vmatpush.msrb.mxu2 %v2624_v6  ;;  %1387 = vmatpush.msrb.mxu3 %v2624_v6  ;;  %v799_v20 = vor.u32 1.1754944e-38, %v798_v24  ;;  %vm797_vm9 = vcmp.eq.f32.partialorder %v796_v23, 8.507059e+37 }
 0x253   : > { %1329 = vmatpush.msrb.mxu0 %v2624_v6  ;;  %1348 = vmatpush.msrb.mxu1 %v2624_v6  ;;  %2390 = vpow2.f32 %v1613_v13 }
 0x254   : > { %1369 = vmatpush.msrb.mxu2 %v2624_v6  ;;  %1388 = vmatpush.msrb.mxu3 %v2624_v6  ;;  %2392 = vrcp.f32 %v3700_v44 }
 0x255   : > { %1330 = vmatpush.msrb.mxu0 %v2624_v6  ;;  %1349 = vmatpush.msrb.mxu1 %v2624_v6 }
 0x256   : > { %1370 = vmatpush.msrb.mxu2 %v2624_v6  ;;  %1389 = vmatpush.msrb.mxu3 %v2624_v6 }
 0x257   : > { %1331 = vmatpush.msrb.mxu0 %v2624_v6  ;;  %1350 = vmatpush.msrb.mxu1 %v2624_v6  ;;  %v3704_v55 = vpop.xlane.xlu2 %1191 }
 0x258   : > { %1371 = vmatpush.msrb.mxu2 %v2624_v6  ;;  %1390 = vmatpush.msrb.mxu3 %v2624_v6 }
 0x259   : > { %1332 = vmatpush.msrb.mxu0 %v2624_v6  ;;  %1351 = vmatpush.msrb.mxu1 %v2624_v6  ;;  %v2391_v17 = vpop.eup %2390 }
 0x25a   : > { %1372 = vmatpush.msrb.mxu2 %v2624_v6  ;;  %1391 = vmatpush.msrb.mxu3 %v2624_v6  ;;  %v2393_v53 = vpop.eup %2392 }
 0x25b   : > { %1333 = vmatpush.msrb.mxu0 %v2624_v6  ;;  %1352 = vmatpush.msrb.mxu1 %v2624_v6  ;;  %v788_v8 = vmul.f32 %v2393_v53, %v3700_v44  ;;  %vm793_vm7 = vweird.f32 %v2393_v53 }
 0x25c   : > { %1373 = vmatpush.msrb.mxu2 %v2624_v6  ;;  %1392 = vmatpush.msrb.mxu3 %v2624_v6  ;;  %vm794_vm8 = vmor %vm792_vm6, %vm793_vm7 }
 0x25d   : > { %1334 = vmatpush.msrb.mxu0 %v2624_v6  ;;  %1353 = vmatpush.msrb.mxu1 %v2624_v6  ;;  %v789_v7 = vsub.f32 1.0, %v788_v8 }
 0x25e   : > { %1374 = vmatpush.msrb.mxu2 %v2624_v6  ;;  %1393 = vmatpush.msrb.mxu3 %v2624_v6 }
 0x25f   : > { %1615 = vadd.xlane.f32.xlu2 %v2391_v17  ;;  %1335 = vmatpush.msrb.mxu0 %v2624_v6  ;;  %v790_v57 = vmul.f32 %v2393_v53, %v789_v7  ;;  %v3715_v17 = vld [vmem:[%s2843_s11] sm:$0xff] }
 0x260   : > { %1354 = vmatpush.msrb.mxu1 %v2624_v6  ;;  %1375 = vmatpush.msrb.mxu2 %v2624_v6 }
 0x261   : > { %1394 = vmatpush.msrb.mxu3 %v2624_v6  ;;  %1336 = vmatpush.msrb.mxu0 %v2624_v6  ;;  %v791_v28 = vadd.f32 %v2393_v53, %v790_v57 }
 0x262   : > { %1355 = vmatpush.msrb.mxu1 %v2624_v6  ;;  %1376 = vmatpush.msrb.mxu2 %v2624_v6 }
 0x263   : > { %1395 = vmatpush.msrb.mxu3 %v2624_v6  ;;  %1302 = vmatmul.f32.vlgmr.msra.gmra.mxu2 %v1240_v21  ;;  %v795_v18 = vsel %vm794_vm8, %v2393_v53, %v791_v28 }
 0x264   : > { %1337 = vmatpush.msrb.mxu0 %v2624_v6  ;;  %1356 = vmatpush.msrb.mxu1 %v2624_v6  ;;  %v800_v61 = vsel %vm797_vm9, %v799_v20, %v795_v18 }
 0x265   : > { %1377 = vmatpush.msrb.mxu2 %v2624_v6  ;;  %1396 = vmatpush.msrb.mxu3 %v2624_v6  ;;  %v3710_v2 = vmul.f32 %v3455_v5, %v800_v61 }
 0x266   : > { %1262 = vmatmul.f32.vlgmr.msra.gmra.mxu0 %v1238_v27  ;;  %1322 = vmatmul.f32.vlgmr.msra.gmra.mxu3 %v1241_v29 }
 0x267   : > { %1338 = vmatpush.msrb.mxu0 %v2624_v6  ;;  %1357 = vmatpush.msrb.mxu1 %v2624_v6 }
 0x268   : > { %1378 = vmatpush.msrb.mxu2 %v2624_v6  ;;  %1397 = vmatpush.msrb.mxu3 %v2624_v6 }
 0x269   : > { %1282 = vmatmul.f32.vlgmr.msra.gmra.mxu1 %v1239_v35  ;;  %1339 = vmatpush.msrb.mxu0 %v2624_v6 }
 0x26a   : > { %1358 = vmatpush.msrb.mxu1 %v2624_v6  ;;  %1379 = vmatpush.msrb.mxu2 %v2624_v6 }
 0x26b   : > { %1398 = vmatpush.msrb.mxu3 %v2624_v6  ;;  %1340 = vmatpush.msrb.mxu0 %v2624_v6 }
 0x26c   : > { %1359 = vmatpush.msrb.mxu1 %v2624_v6  ;;  %1380 = vmatpush.msrb.mxu2 %v2624_v6 }
 0x26d   : > { %1399 = vmatpush.msrb.mxu3 %v2624_v6  ;;  %1341 = vmatpush.msrb.mxu0 %v2624_v6 }
 0x26e   : > { %1360 = vmatpush.msrb.mxu1 %v2624_v6  ;;  %1381 = vmatpush.msrb.mxu2 %v2624_v6 }
 0x26f   : > { %1400 = vmatpush.msrb.mxu3 %v2624_v6  ;;  %1342 = vmatmul.f32.vlgmr.msrb.gmra.mxu0 %v1242_v39 }
 0x270   : > { %1382 = vmatmul.f32.vlgmr.msrb.gmra.mxu2 %v1244_v41  ;;  %1361 = vmatpush.msrb.mxu1 %v2624_v6 }
 0x271   : > { %1401 = vmatpush.msrb.mxu3 %v2624_v6  ;;  %1362 = vmatmul.f32.vlgmr.msrb.gmra.mxu1 %v1243_v42 }
 0x272   : > { %1402 = vmatmul.f32.vlgmr.msrb.gmra.mxu3 %v1245_v43  ;;  %1446 = vmatpush.msra.mxu0 %v2624_v6 }
 0x273   : > { %1486 = vmatpush.msra.mxu2 %v2624_v6  ;;  %1466 = vmatpush.msra.mxu1 %v2624_v6 }
 0x274   : > { %1447 = vmatpush.msra.mxu0 %v2624_v6  ;;  %1506 = vmatpush.msra.mxu3 %v2624_v6 }
 0x275   : > { %1487 = vmatpush.msra.mxu2 %v2624_v6  ;;  %1467 = vmatpush.msra.mxu1 %v2624_v6 }
 0x276   : > { %1448 = vmatpush.msra.mxu0 %v2624_v6  ;;  %1507 = vmatpush.msra.mxu3 %v2624_v6 }
 0x277   : > { %1488 = vmatpush.msra.mxu2 %v2624_v6  ;;  %1468 = vmatpush.msra.mxu1 %v2624_v6 }
 0x278   : > { %1449 = vmatpush.msra.mxu0 %v2624_v6  ;;  %1508 = vmatpush.msra.mxu3 %v2624_v6 }
 0x279   : > { %1489 = vmatpush.msra.mxu2 %v2624_v6  ;;  %1469 = vmatpush.msra.mxu1 %v2624_v6 }
 0x27a   : > { %1450 = vmatpush.msra.mxu0 %v2624_v6  ;;  %1509 = vmatpush.msra.mxu3 %v2624_v6 }
 0x27b   : > { %1490 = vmatpush.msra.mxu2 %v2624_v6  ;;  %1470 = vmatpush.msra.mxu1 %v2624_v6 }
 0x27c   : > { %1451 = vmatpush.msra.mxu0 %v2624_v6  ;;  %1510 = vmatpush.msra.mxu3 %v2624_v6 }
 0x27d   : > { %1491 = vmatpush.msra.mxu2 %v2624_v6  ;;  %1471 = vmatpush.msra.mxu1 %v2624_v6 }
 0x27e   : > { %1452 = vmatpush.msra.mxu0 %v2624_v6  ;;  %1511 = vmatpush.msra.mxu3 %v2624_v6 }
 0x27f   : > { %1492 = vmatpush.msra.mxu2 %v2624_v6  ;;  %1472 = vmatpush.msra.mxu1 %v2624_v6 }
 0x280   : > { %1453 = vmatpush.msra.mxu0 %v2624_v6  ;;  %1512 = vmatpush.msra.mxu3 %v2624_v6 }
 0x281   : > { %1493 = vmatpush.msra.mxu2 %v2624_v6  ;;  %1473 = vmatpush.msra.mxu1 %v2624_v6 }
 0x282   : > { %1454 = vmatpush.msra.mxu0 %v2624_v6  ;;  %1513 = vmatpush.msra.mxu3 %v2624_v6 }
 0x283   : > { %1494 = vmatpush.msra.mxu2 %v2624_v6  ;;  %1474 = vmatpush.msra.mxu1 %v2624_v6 }
 0x284   : > { %1455 = vmatpush.msra.mxu0 %v2624_v6  ;;  %1514 = vmatpush.msra.mxu3 %v2624_v6 }
 0x285   : > { %1495 = vmatpush.msra.mxu2 %v2624_v6  ;;  %1475 = vmatpush.msra.mxu1 %v2624_v6 }
 0x286   : > { %1456 = vmatpush.msra.mxu0 %v2624_v6  ;;  %1515 = vmatpush.msra.mxu3 %v2624_v6 }
 0x287   : > { %1496 = vmatpush.msra.mxu2 %v2624_v6  ;;  %1476 = vmatpush.msra.mxu1 %v2624_v6 }
 0x288   : > { %1457 = vmatpush.msra.mxu0 %v2624_v6  ;;  %1516 = vmatpush.msra.mxu3 %v2624_v6 }
 0x289   : > { %1497 = vmatpush.msra.mxu2 %v2624_v6  ;;  %1477 = vmatpush.msra.mxu1 %v2624_v6 }
 0x28a   : > { %1458 = vmatpush.msra.mxu0 %v2624_v6  ;;  %1517 = vmatpush.msra.mxu3 %v2624_v6 }
 0x28b   : > { %1498 = vmatpush.msra.mxu2 %v2624_v6  ;;  %1478 = vmatpush.msra.mxu1 %v2624_v6 }
 0x28c   : > { %1459 = vmatpush.msra.mxu0 %v2624_v6  ;;  %1518 = vmatpush.msra.mxu3 %v2624_v6 }
 0x28d   : > { %1499 = vmatpush.msra.mxu2 %v2624_v6  ;;  %1479 = vmatpush.msra.mxu1 %v2624_v6 }
 0x28e   : > { %1460 = vmatpush.msra.mxu0 %v2624_v6  ;;  %1519 = vmatpush.msra.mxu3 %v2624_v6 }
 0x28f   : > { %1500 = vmatpush.msra.mxu2 %v2624_v6  ;;  %1480 = vmatpush.msra.mxu1 %v2624_v6 }
 0x290   : > { %1461 = vmatpush.msra.mxu0 %v2624_v6  ;;  %1520 = vmatpush.msra.mxu3 %v2624_v6 }
 0x291   : > { %1501 = vmatpush.msra.mxu2 %v2624_v6  ;;  %1481 = vmatpush.msra.mxu1 %v2624_v6 }
 0x292   : > { %1526 = vmatpush.msrb.mxu0 %v2624_v6  ;;  %1521 = vmatpush.msra.mxu3 %v2624_v6 }
 0x293   : > { %1566 = vmatpush.msrb.mxu2 %v2624_v6  ;;  %1546 = vmatpush.msrb.mxu1 %v2624_v6 }
 0x294   : > { %1527 = vmatpush.msrb.mxu0 %v2624_v6  ;;  %1586 = vmatpush.msrb.mxu3 %v2624_v6 }
 0x295   : > { %1567 = vmatpush.msrb.mxu2 %v2624_v6  ;;  %1547 = vmatpush.msrb.mxu1 %v2624_v6 }
 0x296   : > { %1528 = vmatpush.msrb.mxu0 %v2624_v6  ;;  %1587 = vmatpush.msrb.mxu3 %v2624_v6 }
 0x297   : > { %1568 = vmatpush.msrb.mxu2 %v2624_v6  ;;  %1548 = vmatpush.msrb.mxu1 %v2624_v6 }
 0x298   : > { %1529 = vmatpush.msrb.mxu0 %v2624_v6  ;;  %1588 = vmatpush.msrb.mxu3 %v2624_v6 }
 0x299   : > { %1569 = vmatpush.msrb.mxu2 %v2624_v6  ;;  %1549 = vmatpush.msrb.mxu1 %v2624_v6 }
 0x29a   : > { %1530 = vmatpush.msrb.mxu0 %v2624_v6  ;;  %1589 = vmatpush.msrb.mxu3 %v2624_v6 }
 0x29b   : > { %1570 = vmatpush.msrb.mxu2 %v2624_v6  ;;  %1550 = vmatpush.msrb.mxu1 %v2624_v6 }
 0x29c   : > { %1531 = vmatpush.msrb.mxu0 %v2624_v6  ;;  %1590 = vmatpush.msrb.mxu3 %v2624_v6 }
 0x29d   : > { %1571 = vmatpush.msrb.mxu2 %v2624_v6  ;;  %1551 = vmatpush.msrb.mxu1 %v2624_v6 }
 0x29e   : > { %1532 = vmatpush.msrb.mxu0 %v2624_v6  ;;  %1591 = vmatpush.msrb.mxu3 %v2624_v6 }
 0x29f   : > { %1572 = vmatpush.msrb.mxu2 %v2624_v6  ;;  %1552 = vmatpush.msrb.mxu1 %v2624_v6 }
 0x2a0   : > { %1533 = vmatpush.msrb.mxu0 %v2624_v6  ;;  %1592 = vmatpush.msrb.mxu3 %v2624_v6 }
 0x2a1   : > { %1573 = vmatpush.msrb.mxu2 %v2624_v6  ;;  %1553 = vmatpush.msrb.mxu1 %v2624_v6 }
 0x2a2   : > { %1534 = vmatpush.msrb.mxu0 %v2624_v6  ;;  %1593 = vmatpush.msrb.mxu3 %v2624_v6 }
 0x2a3   : > { %1574 = vmatpush.msrb.mxu2 %v2624_v6  ;;  %1554 = vmatpush.msrb.mxu1 %v2624_v6 }
 0x2a4   : > { %1535 = vmatpush.msrb.mxu0 %v2624_v6  ;;  %1594 = vmatpush.msrb.mxu3 %v2624_v6 }
 0x2a5   : > { %1575 = vmatpush.msrb.mxu2 %v2624_v6  ;;  %1555 = vmatpush.msrb.mxu1 %v2624_v6 }
 0x2a6   : > { %1536 = vmatpush.msrb.mxu0 %v2624_v6  ;;  %1595 = vmatpush.msrb.mxu3 %v2624_v6 }
 0x2a7   : > { %1576 = vmatpush.msrb.mxu2 %v2624_v6  ;;  %1556 = vmatpush.msrb.mxu1 %v2624_v6  ;;  %v1040_v45 = vpop.f32.mrf.mxu0  ;;  %v1060_v46 = vpop.f32.mrf.mxu1 }
 0x2a8   : > { %1537 = vmatpush.msrb.mxu0 %v2624_v6  ;;  %1596 = vmatpush.msrb.mxu3 %v2624_v6  ;;  %v1061_v52 = vadd.f32 %v1060_v46, %v1040_v45 }
 0x2a9   : > { %1577 = vmatpush.msrb.mxu2 %v2624_v6  ;;  %1557 = vmatpush.msrb.mxu1 %v2624_v6 }
 0x2aa   : > { %1538 = vmatpush.msrb.mxu0 %v2624_v6  ;;  %1597 = vmatpush.msrb.mxu3 %v2624_v6 }
 0x2ab   : > { %1578 = vmatpush.msrb.mxu2 %v2624_v6  ;;  %1558 = vmatpush.msrb.mxu1 %v2624_v6 }
 0x2ac   : > { %1539 = vmatpush.msrb.mxu0 %v2624_v6  ;;  %1598 = vmatpush.msrb.mxu3 %v2624_v6 }
 0x2ad   : > { %1579 = vmatpush.msrb.mxu2 %v2624_v6  ;;  %1559 = vmatpush.msrb.mxu1 %v2624_v6 }
 0x2ae   : > { %1540 = vmatpush.msrb.mxu0 %v2624_v6  ;;  %1599 = vmatpush.msrb.mxu3 %v2624_v6  ;;  %v1080_v51 = vpop.f32.mrf.mxu2  ;;  %v1100_v12 = vpop.f32.mrf.mxu3 }
 0x2af   : > { %1580 = vmatpush.msrb.mxu2 %v2624_v6  ;;  %1560 = vmatpush.msrb.mxu1 %v2624_v6  ;;  %v1081_v54 = vadd.f32 %v1080_v51, %v1061_v52 }
 0x2b0   : > { %1541 = vmatpush.msrb.mxu0 %v2624_v6  ;;  %1600 = vmatpush.msrb.mxu3 %v2624_v6  ;;  %v1120_v10 = vpop.f32.mrf.mxu0  ;;  %v1140_v26 = vpop.f32.mrf.mxu1 }
 0x2b1   : > { %1581 = vmatpush.msrb.mxu2 %v2624_v6  ;;  %1561 = vmatpush.msrb.mxu1 %v2624_v6  ;;  %v1101_v56 = vadd.f32 %v1100_v12, %v1081_v54 }
 0x2b2   : > { %1601 = vmatpush.msrb.mxu3 %v2624_v6 }
 0x2b3   : > { %v1121_v58 = vadd.f32 %v1120_v10, %v1101_v56 }
 0x2b5   : > { %v1141_v32 = vadd.f32 %v1140_v26, %v1121_v58 }
 0x2b7   : > { %v1160_v15 = vpop.f32.mrf.mxu2  ;;  %v1180_v63 = vpop.f32.mrf.mxu3 }
 0x2b8   : > { %v1161_v34 = vadd.f32 %v1160_v15, %v1141_v32 }
 0x2ba   : > { %v1181_v4 = vadd.f32 %v1180_v63, %v1161_v34 }
 0x2bc   : > { %v1183_v14 = vmul.f32 0.0009765625, %v1181_v4 }
 0x2be   : > { %v1215_v27 = vmul.f32 %v1183_v14, %v3715_v17 }
 0x2c0   : > { %v1216_v41 = vsel %vm1202_vm10, %v1215_v27, 0.0  ;;  %v3833_v27 = vld [vmem:[%s3830_s12 + $0x10] sm:$0xff] }
 0x2d2   : > { %v1616_v16 = vpop.xlane.xlu2 %1615 }
 0x2d3   : > { %2394 = vlog2.f32 %v1616_v16 }
 0x2d9   : > { %v2395_v62 = vpop.eup %2394 }
 0x2da   : > { %v1618_v1 = vmul.f32 0.6931472, %v2395_v62 }
 0x2dc   : > { %v1619_v9 = vsub.f32 %v3468_v11, %v1618_v1 }
 0x2de   : > { %v1620_v13 = vmul.f32 %v1619_v9, %v3710_v2 }
 0x2e0   : > { %1621 = vadd.xlane.f32.xlu0 %v1620_v13 }
 0x2e3   : > { %v1263_v21 = vpop.f32.mrf.mxu0 }
 0x2e6   : > { %v1283_v29 = vpop.f32.mrf.mxu1  ;;  %v1303_v35 = vpop.f32.mrf.mxu2 }
 0x2e7   : > { %v1284_v39 = vadd.f32 %v1283_v29, %v1263_v21  ;;  %v3840_v29 = vld [vmem:[%s3830_s12] sm:$0xff] }
 0x2e8   : > { %1217 = vadd.xlane.f32.xlu0 %v1216_v41  ;;  %v1661_v41 = vmul.f32 %v3840_v29, %v3840_v29 }
 0x2e9   : > { %v1304_v5 = vadd.f32 %v1303_v35, %v1284_v39  ;;  %v1323_v42 = vpop.f32.mrf.mxu3  ;;  %v1663_v35 = vmul.f32 %v3833_v27, %v3833_v27  ;;  %v3847_v39 = vld [vmem:[%s3830_s12 + $0x18] sm:$0xff] }
 0x2eb   : > { %v1324_v43 = vadd.f32 %v1323_v42, %v1304_v5  ;;  %v3856_v5 = vld [vmem:[%s3830_s12 + $0x8] sm:$0xff]  ;;  %v1664_v42 = vmul.f32 %v3847_v39, %v3847_v39 }
 0x2ec   : > { %v1343_v11 = vpop.f32.mrf.mxu0 }
 0x2ed   : > { %v1344_v45 = vadd.f32 %v1343_v11, %v1324_v43  ;;  %v1662_v43 = vmul.f32 %v3856_v5, %v3856_v5  ;;  %v3873_v11 = vld [vmem:[%s3830_s12 + $0x20] sm:$0xff] }
 0x2ee   : > { %v1363_v46 = vpop.f32.mrf.mxu1 }
 0x2ef   : > { %v1364_v51 = vadd.f32 %v1363_v46, %v1344_v45  ;;  %v3876_v45 = vld [vmem:[%s3830_s12 + $0x30] sm:$0xff]  ;;  %v3883_v46 = vld [vmem:[%s3830_s12 + $0x28] sm:$0xff] }
 0x2f3   : > { %v1383_v52 = vpop.f32.mrf.mxu2 }
 0x2f4   : > { %v1384_v53 = vadd.f32 %v1383_v52, %v1364_v51  ;;  %v3886_v51 = vld [vmem:[%s3830_s12 + $0x38] sm:$0xff]  ;;  %v1665_v52 = vmul.f32 %v3873_v11, %v3873_v11 }
 0x2f5   : > { %v1403_v54 = vpop.f32.mrf.mxu3 }
 0x2f6   : > { %v1404_v8 = vadd.f32 %v1403_v54, %v1384_v53  ;;  %v1667_v53 = vmul.f32 %v3876_v45, %v3876_v45  ;;  %v1666_v54 = vmul.f32 %v3883_v46, %v3883_v46 }
 0x2f8   : > { %v1406_v12 = vmax.f32 %v1404_v8, 1e-24  ;;  %v1668_v8 = vmul.f32 %v3886_v51, %v3886_v51 }
 0x2fa   : > { %2396 = vrsqrt.f32 %v1406_v12  ;;  %vm1413_vm12 = vweird.f32 %v1406_v12 }
 0x300   : > { %v2397_v7 = vpop.eup %2396 }
 0x301   : > { %v1408_v56 = vmul.f32 %v2397_v7, %v1406_v12  ;;  %vm1414_vm11 = vweird.f32 %v2397_v7 }
 0x302   : > { %vm1415_vm13 = vmor %vm1413_vm12, %vm1414_vm11 }
 0x303   : > { %v1409_v57 = vmul.f32 %v2397_v7, %v1408_v56 }
 0x305   : > { %v1410_v10 = vmul.f32 0.5, %v1409_v57 }
 0x307   : > { %v1411_v58 = vsub.f32 1.5, %v1410_v10 }
 0x309   : > { %v1412_v24 = vmul.f32 %v2397_v7, %v1411_v58 }
 0x30b   : > { %v1416_v28 = vsel %vm1415_vm13, %v2397_v7, %v1412_v24 }
 0x30c   : > { %1419 = vperm.xlu1 %2381, %v1416_v28  }
 0x37e   : > { %v1420_v23 = vpop.permute.xlu1 %1419 }
 0x37f   : > { %v1422_v26 = vmul.f32 %v1420_v23, %v3509_v22  ;;  %v1423_v16 = vmul.f32 %v1420_v23, %v3525_v30  ;;  %v1424_v32 = vmul.f32 %v1420_v23, %v3499_v19  ;;  %v1425_v20 = vmul.f32 %v1420_v23, %v3512_v25 }
 0x380   : > { %v1426_v22 = vmul.f32 %v1420_v23, %v3539_v36  ;;  %v1427_v30 = vmul.f32 %v1420_v23, %v3548_v38  ;;  %v1428_v19 = vmul.f32 %v1420_v23, %v3543_v37  ;;  %v1429_v25 = vmul.f32 %v1420_v23, %v3555_v40 }
 0x381   : > { %v1430_v15 = vsub.f32 %v1422_v26, %v3350_v47  ;;  %v1431_v18 = vsub.f32 %v1423_v16, %v3353_v48  ;;  %v1432_v34 = vsub.f32 %v1424_v32, %v3356_v49  ;;  %v1433_v61 = vsub.f32 %v1425_v20, %v3359_v50 }
 0x382   : > { %v1434_v36 = vsub.f32 %v1426_v22, %v3374_v59  ;;  %v1435_v38 = vsub.f32 %v1427_v30, %v3377_v60  ;;  %v1436_v37 = vsub.f32 %v1428_v19, %v3382_v31  ;;  %v1437_v40 = vsub.f32 %v1429_v25, %v3385_v33 }
 0x383   : > { %v1438_v62 = vand.u32 2147483647, %v1430_v15  ;;  %v1439_v63 = vand.u32 2147483647, %v1431_v18  ;;  %v1440_v1 = vand.u32 2147483647, %v1432_v34 }
 0x384   : > { %v1441_v4 = vand.u32 2147483647, %v1433_v61  ;;  %v1442_v9 = vand.u32 2147483647, %v1434_v36  ;;  %v1443_v13 = vand.u32 2147483647, %v1435_v38 }
 0x385   : > { %1462 = vmatmul.f32.vlgmr.msra.gmra.mxu0 %v1438_v62  ;;  %1482 = vmatmul.f32.vlgmr.msra.gmra.mxu1 %v1439_v63  ;;  %v1444_v14 = vand.u32 2147483647, %v1436_v37  ;;  %v1445_v21 = vand.u32 2147483647, %v1437_v40 }
 0x386   : > { %1502 = vmatmul.f32.vlgmr.msra.gmra.mxu2 %v1440_v1  ;;  %1522 = vmatmul.f32.vlgmr.msra.gmra.mxu3 %v1441_v4 }
 0x387   : > { %1669 = vmatpush.msra.mxu0 %v2624_v6  ;;  %1709 = vmatpush.msra.mxu2 %v2624_v6 }
 0x388   : > { %1689 = vmatpush.msra.mxu1 %v2624_v6  ;;  %1729 = vmatpush.msra.mxu3 %v2624_v6 }
 0x389   : > { %1670 = vmatpush.msra.mxu0 %v2624_v6  ;;  %1710 = vmatpush.msra.mxu2 %v2624_v6 }
 0x38a   : > { %1690 = vmatpush.msra.mxu1 %v2624_v6  ;;  %1730 = vmatpush.msra.mxu3 %v2624_v6 }
 0x38b   : > { %1671 = vmatpush.msra.mxu0 %v2624_v6  ;;  %1711 = vmatpush.msra.mxu2 %v2624_v6 }
 0x38c   : > { %1691 = vmatpush.msra.mxu1 %v2624_v6  ;;  %1731 = vmatpush.msra.mxu3 %v2624_v6 }
 0x38d   : > { %1672 = vmatpush.msra.mxu0 %v2624_v6  ;;  %1712 = vmatpush.msra.mxu2 %v2624_v6 }
 0x38e   : > { %1542 = vmatmul.f32.vlgmr.msrb.gmra.mxu0 %v1442_v9  ;;  %1562 = vmatmul.f32.vlgmr.msrb.gmra.mxu1 %v1443_v13 }
 0x38f   : > { %1582 = vmatmul.f32.vlgmr.msrb.gmra.mxu2 %v1444_v14  ;;  %1602 = vmatmul.f32.vlgmr.msrb.gmra.mxu3 %v1445_v21 }
 0x390   : > { %1673 = vmatpush.msra.mxu0 %v2624_v6  ;;  %1692 = vmatpush.msra.mxu1 %v2624_v6 }
 0x391   : > { %1713 = vmatpush.msra.mxu2 %v2624_v6  ;;  %1732 = vmatpush.msra.mxu3 %v2624_v6 }
 0x392   : > { %1674 = vmatpush.msra.mxu0 %v2624_v6  ;;  %1693 = vmatpush.msra.mxu1 %v2624_v6 }
 0x393   : > { %1714 = vmatpush.msra.mxu2 %v2624_v6  ;;  %1733 = vmatpush.msra.mxu3 %v2624_v6 }
 0x394   : > { %1675 = vmatpush.msra.mxu0 %v2624_v6  ;;  %1694 = vmatpush.msra.mxu1 %v2624_v6 }
 0x395   : > { %1715 = vmatpush.msra.mxu2 %v2624_v6  ;;  %1734 = vmatpush.msra.mxu3 %v2624_v6 }
 0x396   : > { %1676 = vmatpush.msra.mxu0 %v2624_v6  ;;  %1695 = vmatpush.msra.mxu1 %v2624_v6 }
 0x397   : > { %1716 = vmatpush.msra.mxu2 %v2624_v6  ;;  %1735 = vmatpush.msra.mxu3 %v2624_v6 }
 0x398   : > { %1677 = vmatpush.msra.mxu0 %v2624_v6  ;;  %1696 = vmatpush.msra.mxu1 %v2624_v6 }
 0x399   : > { %1717 = vmatpush.msra.mxu2 %v2624_v6  ;;  %1736 = vmatpush.msra.mxu3 %v2624_v6 }
 0x39a   : > { %1678 = vmatpush.msra.mxu0 %v2624_v6  ;;  %1697 = vmatpush.msra.mxu1 %v2624_v6 }
 0x39b   : > { %1718 = vmatpush.msra.mxu2 %v2624_v6  ;;  %1737 = vmatpush.msra.mxu3 %v2624_v6 }
 0x39c   : > { %1679 = vmatpush.msra.mxu0 %v2624_v6  ;;  %1698 = vmatpush.msra.mxu1 %v2624_v6 }
 0x39d   : > { %1719 = vmatpush.msra.mxu2 %v2624_v6  ;;  %1738 = vmatpush.msra.mxu3 %v2624_v6 }
 0x39e   : > { %1680 = vmatpush.msra.mxu0 %v2624_v6  ;;  %1699 = vmatpush.msra.mxu1 %v2624_v6 }
 0x39f   : > { %1720 = vmatpush.msra.mxu2 %v2624_v6  ;;  %1739 = vmatpush.msra.mxu3 %v2624_v6 }
 0x3a0   : > { %1681 = vmatpush.msra.mxu0 %v2624_v6  ;;  %1700 = vmatpush.msra.mxu1 %v2624_v6 }
 0x3a1   : > { %1721 = vmatpush.msra.mxu2 %v2624_v6  ;;  %1740 = vmatpush.msra.mxu3 %v2624_v6 }
 0x3a2   : > { %1682 = vmatpush.msra.mxu0 %v2624_v6  ;;  %1701 = vmatpush.msra.mxu1 %v2624_v6 }
 0x3a3   : > { %1722 = vmatpush.msra.mxu2 %v2624_v6  ;;  %1741 = vmatpush.msra.mxu3 %v2624_v6 }
 0x3a4   : > { %1683 = vmatpush.msra.mxu0 %v2624_v6  ;;  %1702 = vmatpush.msra.mxu1 %v2624_v6 }
 0x3a5   : > { %1723 = vmatpush.msra.mxu2 %v2624_v6  ;;  %1742 = vmatpush.msra.mxu3 %v2624_v6 }
 0x3a6   : > { %1684 = vmatpush.msra.mxu0 %v2624_v6  ;;  %1703 = vmatpush.msra.mxu1 %v2624_v6 }
 0x3a7   : > { %1724 = vmatpush.msra.mxu2 %v2624_v6  ;;  %1743 = vmatpush.msra.mxu3 %v2624_v6 }
 0x3a8   : > { %1749 = vmatpush.msrb.mxu0 %v2624_v6  ;;  %1704 = vmatpush.msra.mxu1 %v2624_v6 }
 0x3a9   : > { %1789 = vmatpush.msrb.mxu2 %v2624_v6  ;;  %1744 = vmatpush.msra.mxu3 %v2624_v6 }
 0x3aa   : > { %1750 = vmatpush.msrb.mxu0 %v2624_v6  ;;  %1769 = vmatpush.msrb.mxu1 %v2624_v6 }
 0x3ab   : > { %1790 = vmatpush.msrb.mxu2 %v2624_v6  ;;  %1809 = vmatpush.msrb.mxu3 %v2624_v6 }
 0x3ac   : > { %1751 = vmatpush.msrb.mxu0 %v2624_v6  ;;  %1770 = vmatpush.msrb.mxu1 %v2624_v6 }
 0x3ad   : > { %1791 = vmatpush.msrb.mxu2 %v2624_v6  ;;  %1810 = vmatpush.msrb.mxu3 %v2624_v6 }
 0x3ae   : > { %1752 = vmatpush.msrb.mxu0 %v2624_v6  ;;  %1771 = vmatpush.msrb.mxu1 %v2624_v6 }
 0x3af   : > { %1792 = vmatpush.msrb.mxu2 %v2624_v6  ;;  %1811 = vmatpush.msrb.mxu3 %v2624_v6 }
 0x3b0   : > { %1753 = vmatpush.msrb.mxu0 %v2624_v6  ;;  %1772 = vmatpush.msrb.mxu1 %v2624_v6 }
 0x3b1   : > { %1793 = vmatpush.msrb.mxu2 %v2624_v6  ;;  %1812 = vmatpush.msrb.mxu3 %v2624_v6 }
 0x3b2   : > { %1754 = vmatpush.msrb.mxu0 %v2624_v6  ;;  %1773 = vmatpush.msrb.mxu1 %v2624_v6 }
 0x3b3   : > { %1794 = vmatpush.msrb.mxu2 %v2624_v6  ;;  %1813 = vmatpush.msrb.mxu3 %v2624_v6 }
 0x3b4   : > { %1755 = vmatpush.msrb.mxu0 %v2624_v6  ;;  %1774 = vmatpush.msrb.mxu1 %v2624_v6 }
 0x3b5   : > { %1795 = vmatpush.msrb.mxu2 %v2624_v6  ;;  %1814 = vmatpush.msrb.mxu3 %v2624_v6 }
 0x3b6   : > { %1756 = vmatpush.msrb.mxu0 %v2624_v6  ;;  %1775 = vmatpush.msrb.mxu1 %v2624_v6 }
 0x3b7   : > { %1796 = vmatpush.msrb.mxu2 %v2624_v6  ;;  %1815 = vmatpush.msrb.mxu3 %v2624_v6 }
 0x3b8   : > { %1757 = vmatpush.msrb.mxu0 %v2624_v6  ;;  %1776 = vmatpush.msrb.mxu1 %v2624_v6 }
 0x3b9   : > { %1797 = vmatpush.msrb.mxu2 %v2624_v6  ;;  %1816 = vmatpush.msrb.mxu3 %v2624_v6 }
 0x3ba   : > { %1758 = vmatpush.msrb.mxu0 %v2624_v6  ;;  %1777 = vmatpush.msrb.mxu1 %v2624_v6 }
 0x3bb   : > { %1798 = vmatpush.msrb.mxu2 %v2624_v6  ;;  %1817 = vmatpush.msrb.mxu3 %v2624_v6 }
 0x3bc   : > { %1759 = vmatpush.msrb.mxu0 %v2624_v6  ;;  %1778 = vmatpush.msrb.mxu1 %v2624_v6 }
 0x3bd   : > { %1799 = vmatpush.msrb.mxu2 %v2624_v6  ;;  %1818 = vmatpush.msrb.mxu3 %v2624_v6 }
 0x3be   : > { %1725 = vmatmul.f32.vlgmr.msra.gmra.mxu2 %v1663_v35  ;;  %1760 = vmatpush.msrb.mxu0 %v2624_v6 }
 0x3bf   : > { %1779 = vmatpush.msrb.mxu1 %v2624_v6  ;;  %1800 = vmatpush.msrb.mxu2 %v2624_v6 }
 0x3c0   : > { %1819 = vmatpush.msrb.mxu3 %v2624_v6  ;;  %1685 = vmatmul.f32.vlgmr.msra.gmra.mxu0 %v1661_v41 }
 0x3c1   : > { %1745 = vmatmul.f32.vlgmr.msra.gmra.mxu3 %v1664_v42  ;;  %1761 = vmatpush.msrb.mxu0 %v2624_v6 }
 0x3c2   : > { %1780 = vmatpush.msrb.mxu1 %v2624_v6  ;;  %1801 = vmatpush.msrb.mxu2 %v2624_v6 }
 0x3c3   : > { %1820 = vmatpush.msrb.mxu3 %v2624_v6  ;;  %1705 = vmatmul.f32.vlgmr.msra.gmra.mxu1 %v1662_v43 }
 0x3c4   : > { %1762 = vmatpush.msrb.mxu0 %v2624_v6  ;;  %1781 = vmatpush.msrb.mxu1 %v2624_v6 }
 0x3c5   : > { %1802 = vmatpush.msrb.mxu2 %v2624_v6  ;;  %1821 = vmatpush.msrb.mxu3 %v2624_v6 }
 0x3c6   : > { %1763 = vmatpush.msrb.mxu0 %v2624_v6  ;;  %1782 = vmatpush.msrb.mxu1 %v2624_v6 }
 0x3c7   : > { %1803 = vmatpush.msrb.mxu2 %v2624_v6  ;;  %1822 = vmatpush.msrb.mxu3 %v2624_v6 }
 0x3c8   : > { %1764 = vmatpush.msrb.mxu0 %v2624_v6  ;;  %1783 = vmatpush.msrb.mxu1 %v2624_v6 }
 0x3c9   : > { %1804 = vmatpush.msrb.mxu2 %v2624_v6  ;;  %1823 = vmatpush.msrb.mxu3 %v2624_v6 }
 0x3ca   : > { %1765 = vmatmul.f32.vlgmr.msrb.gmra.mxu0 %v1665_v52  ;;  %1805 = vmatmul.f32.vlgmr.msrb.gmra.mxu2 %v1667_v53  ;;  %v2307_v52 = vld [vmem:[%s2861_s22 + $0x10] sm:$0xff]  ;;  %s2564_s22 = scalar_lea.hbm %s2563_s30, 1 }
 0x3cb   : > { %1784 = vmatpush.msrb.mxu1 %v2624_v6  ;;  %1824 = vmatpush.msrb.mxu3 %v2624_v6  ;;  %v2032_v53 = vmul.f32 0.33333334, %v2307_v52  ;;  %p2565_p5 = scmp.ne.s32.totalorder %s2563_s30, %s2564_s22  ;;  %p2570_p12 = scmp.lt.s32.totalorder %s2568_s17, %s2564_s22 }
 0x3cc   : > { %1785 = vmatmul.f32.vlgmr.msrb.gmra.mxu1 %v1666_v54  ;;  %1825 = vmatmul.f32.vlgmr.msrb.gmra.mxu3 %v1668_v8 }
 0x3cd   : > { %1869 = vmatpush.msra.mxu0 %v2624_v6  ;;  %1889 = vmatpush.msra.mxu1 %v2624_v6  ;;  %p2566_p6 = pnand %p2565_p5, %p2714_p9  ;;  %p2571_p13 = por %p2570_p12, %p2569_p11 }
 0x3ce   : > { %1909 = vmatpush.msra.mxu2 %v2624_v6  ;;  %1929 = vmatpush.msra.mxu3 %v2624_v6 }
 0x3cf   : > { %1870 = vmatpush.msra.mxu0 %v2624_v6  ;;  %1890 = vmatpush.msra.mxu1 %v2624_v6  ;;  %p2567_p8 = pneg %p2566_p6 }
 0x3d0   : > { %1910 = vmatpush.msra.mxu2 %v2624_v6  ;;  %1930 = vmatpush.msra.mxu3 %v2624_v6 }
 0x3d1   : > { %1871 = vmatpush.msra.mxu0 %v2624_v6  ;;  %1891 = vmatpush.msra.mxu1 %v2624_v6  ;;  %p2572_p0 = pnand %p2571_p13, %p2567_p8 }
 0x3d2   : > { %1911 = vmatpush.msra.mxu2 %v2624_v6  ;;  %1931 = vmatpush.msra.mxu3 %v2624_v6 }
 0x3d3   : > { %1872 = vmatpush.msra.mxu0 %v2624_v6  ;;  %1892 = vmatpush.msra.mxu1 %v2624_v6 }
 0x3d4   : > { %1912 = vmatpush.msra.mxu2 %v2624_v6  ;;  %1932 = vmatpush.msra.mxu3 %v2624_v6 }
 0x3d5   : > { %1873 = vmatpush.msra.mxu0 %v2624_v6  ;;  %1893 = vmatpush.msra.mxu1 %v2624_v6 }
 0x3d6   : > { %1913 = vmatpush.msra.mxu2 %v2624_v6  ;;  %1933 = vmatpush.msra.mxu3 %v2624_v6 }
 0x3d7   : > { %1874 = vmatpush.msra.mxu0 %v2624_v6  ;;  %1894 = vmatpush.msra.mxu1 %v2624_v6 }
 0x3d8   : > { %1914 = vmatpush.msra.mxu2 %v2624_v6  ;;  %1934 = vmatpush.msra.mxu3 %v2624_v6 }
 0x3d9   : > { %1875 = vmatpush.msra.mxu0 %v2624_v6  ;;  %1895 = vmatpush.msra.mxu1 %v2624_v6 }
 0x3da   : > { %1915 = vmatpush.msra.mxu2 %v2624_v6  ;;  %1935 = vmatpush.msra.mxu3 %v2624_v6 }
 0x3db   : > { %1876 = vmatpush.msra.mxu0 %v2624_v6  ;;  %1896 = vmatpush.msra.mxu1 %v2624_v6 }
 0x3dc   : > { %1916 = vmatpush.msra.mxu2 %v2624_v6  ;;  %1936 = vmatpush.msra.mxu3 %v2624_v6 }
 0x3dd   : > { %1877 = vmatpush.msra.mxu0 %v2624_v6  ;;  %1897 = vmatpush.msra.mxu1 %v2624_v6 }
 0x3de   : > { %1917 = vmatpush.msra.mxu2 %v2624_v6  ;;  %1937 = vmatpush.msra.mxu3 %v2624_v6 }
 0x3df   : > { %1878 = vmatpush.msra.mxu0 %v2624_v6  ;;  %1898 = vmatpush.msra.mxu1 %v2624_v6 }
 0x3e0   : > { %1918 = vmatpush.msra.mxu2 %v2624_v6  ;;  %1938 = vmatpush.msra.mxu3 %v2624_v6 }
 0x3e1   : > { %1879 = vmatpush.msra.mxu0 %v2624_v6  ;;  %1899 = vmatpush.msra.mxu1 %v2624_v6 }
 0x3e2   : > { %1919 = vmatpush.msra.mxu2 %v2624_v6  ;;  %1939 = vmatpush.msra.mxu3 %v2624_v6 }
 0x3e3   : > { %1880 = vmatpush.msra.mxu0 %v2624_v6  ;;  %1900 = vmatpush.msra.mxu1 %v2624_v6 }
 0x3e4   : > { %1920 = vmatpush.msra.mxu2 %v2624_v6  ;;  %1940 = vmatpush.msra.mxu3 %v2624_v6 }
 0x3e5   : > { %1881 = vmatpush.msra.mxu0 %v2624_v6  ;;  %1901 = vmatpush.msra.mxu1 %v2624_v6 }
 0x3e6   : > { %1921 = vmatpush.msra.mxu2 %v2624_v6  ;;  %1941 = vmatpush.msra.mxu3 %v2624_v6 }
 0x3e7   : > { %1882 = vmatpush.msra.mxu0 %v2624_v6  ;;  %1902 = vmatpush.msra.mxu1 %v2624_v6 }
 0x3e8   : > { %1922 = vmatpush.msra.mxu2 %v2624_v6  ;;  %1942 = vmatpush.msra.mxu3 %v2624_v6 }
 0x3e9   : > { %1883 = vmatpush.msra.mxu0 %v2624_v6  ;;  %1903 = vmatpush.msra.mxu1 %v2624_v6 }
 0x3ea   : > { %1923 = vmatpush.msra.mxu2 %v2624_v6  ;;  %1943 = vmatpush.msra.mxu3 %v2624_v6 }
 0x3eb   : > { %1884 = vmatpush.msra.mxu0 %v2624_v6  ;;  %1904 = vmatpush.msra.mxu1 %v2624_v6 }
 0x3ec   : > { %1924 = vmatpush.msra.mxu2 %v2624_v6  ;;  %1944 = vmatpush.msra.mxu3 %v2624_v6 }
 0x3ed   : > { %1949 = vmatpush.msrb.mxu0 %v2624_v6  ;;  %1969 = vmatpush.msrb.mxu1 %v2624_v6 }
 0x3ee   : > { %1989 = vmatpush.msrb.mxu2 %v2624_v6  ;;  %2009 = vmatpush.msrb.mxu3 %v2624_v6 }
 0x3ef   : > { %1950 = vmatpush.msrb.mxu0 %v2624_v6  ;;  %1970 = vmatpush.msrb.mxu1 %v2624_v6 }
 0x3f0   : > { %1990 = vmatpush.msrb.mxu2 %v2624_v6  ;;  %2010 = vmatpush.msrb.mxu3 %v2624_v6 }
 0x3f1   : > { %1951 = vmatpush.msrb.mxu0 %v2624_v6  ;;  %1971 = vmatpush.msrb.mxu1 %v2624_v6 }
 0x3f2   : > { %1991 = vmatpush.msrb.mxu2 %v2624_v6  ;;  %2011 = vmatpush.msrb.mxu3 %v2624_v6 }
 0x3f3   : > { %1952 = vmatpush.msrb.mxu0 %v2624_v6  ;;  %1972 = vmatpush.msrb.mxu1 %v2624_v6 }
 0x3f4   : > { %1992 = vmatpush.msrb.mxu2 %v2624_v6  ;;  %2012 = vmatpush.msrb.mxu3 %v2624_v6 }
 0x3f5   : > { %1953 = vmatpush.msrb.mxu0 %v2624_v6  ;;  %1973 = vmatpush.msrb.mxu1 %v2624_v6 }
 0x3f6   : > { %1993 = vmatpush.msrb.mxu2 %v2624_v6  ;;  %2013 = vmatpush.msrb.mxu3 %v2624_v6 }
 0x3f7   : > { %1954 = vmatpush.msrb.mxu0 %v2624_v6  ;;  %1974 = vmatpush.msrb.mxu1 %v2624_v6 }
 0x3f8   : > { %1994 = vmatpush.msrb.mxu2 %v2624_v6  ;;  %2014 = vmatpush.msrb.mxu3 %v2624_v6 }
 0x3f9   : > { %1955 = vmatpush.msrb.mxu0 %v2624_v6  ;;  %1975 = vmatpush.msrb.mxu1 %v2624_v6 }
 0x3fa   : > { %1995 = vmatpush.msrb.mxu2 %v2624_v6  ;;  %2015 = vmatpush.msrb.mxu3 %v2624_v6 }
 0x3fb   : > { %1956 = vmatpush.msrb.mxu0 %v2624_v6  ;;  %1976 = vmatpush.msrb.mxu1 %v2624_v6 }
 0x3fc   : > { %1996 = vmatpush.msrb.mxu2 %v2624_v6  ;;  %2016 = vmatpush.msrb.mxu3 %v2624_v6 }
 0x3fd   : > { %1957 = vmatpush.msrb.mxu0 %v2624_v6  ;;  %1977 = vmatpush.msrb.mxu1 %v2624_v6 }
 0x3fe   : > { %1997 = vmatpush.msrb.mxu2 %v2624_v6  ;;  %2017 = vmatpush.msrb.mxu3 %v2624_v6 }
 0x3ff   : > { %1958 = vmatpush.msrb.mxu0 %v2624_v6  ;;  %1978 = vmatpush.msrb.mxu1 %v2624_v6 }
 0x400   : > { %1998 = vmatpush.msrb.mxu2 %v2624_v6  ;;  %2018 = vmatpush.msrb.mxu3 %v2624_v6 }
 0x401   : > { %1959 = vmatpush.msrb.mxu0 %v2624_v6  ;;  %1979 = vmatpush.msrb.mxu1 %v2624_v6 }
 0x402   : > { %v1463_v12 = vpop.f32.mrf.mxu0  ;;  %v1483_v7 = vpop.f32.mrf.mxu1  ;;  %1999 = vmatpush.msrb.mxu2 %v2624_v6  ;;  %2019 = vmatpush.msrb.mxu3 %v2624_v6 }
 0x403   : > { %v1484_v56 = vadd.f32 %v1483_v7, %v1463_v12  ;;  %1960 = vmatpush.msrb.mxu0 %v2624_v6  ;;  %1980 = vmatpush.msrb.mxu1 %v2624_v6 }
 0x404   : > { %2000 = vmatpush.msrb.mxu2 %v2624_v6  ;;  %2020 = vmatpush.msrb.mxu3 %v2624_v6 }
 0x405   : > { %1961 = vmatpush.msrb.mxu0 %v2624_v6  ;;  %1981 = vmatpush.msrb.mxu1 %v2624_v6 }
 0x406   : > { %2001 = vmatpush.msrb.mxu2 %v2624_v6  ;;  %2021 = vmatpush.msrb.mxu3 %v2624_v6 }
 0x407   : > { %1962 = vmatpush.msrb.mxu0 %v2624_v6  ;;  %1982 = vmatpush.msrb.mxu1 %v2624_v6 }
 0x408   : > { %2002 = vmatpush.msrb.mxu2 %v2624_v6  ;;  %2022 = vmatpush.msrb.mxu3 %v2624_v6 }
 0x409   : > { %v1503_v57 = vpop.f32.mrf.mxu2  ;;  %1963 = vmatpush.msrb.mxu0 %v2624_v6  ;;  %1983 = vmatpush.msrb.mxu1 %v2624_v6  ;;  %v1523_v58 = vpop.f32.mrf.mxu3 }
 0x40a   : > { %v1504_v10 = vadd.f32 %v1503_v57, %v1484_v56  ;;  %2003 = vmatpush.msrb.mxu2 %v2624_v6  ;;  %2023 = vmatpush.msrb.mxu3 %v2624_v6 }
 0x40b   : > { %1964 = vmatpush.msrb.mxu0 %v2624_v6  ;;  %1984 = vmatpush.msrb.mxu1 %v2624_v6  ;;  %v1543_v28 = vpop.f32.mrf.mxu0  ;;  %v1563_v26 = vpop.f32.mrf.mxu1 }
 0x40c   : > { %v1524_v24 = vadd.f32 %v1523_v58, %v1504_v10  ;;  %2004 = vmatpush.msrb.mxu2 %v2624_v6  ;;  %2024 = vmatpush.msrb.mxu3 %v2624_v6 }
 0x40e   : > { %v1544_v23 = vadd.f32 %v1543_v28, %v1524_v24 }
 0x410   : > { %v1564_v16 = vadd.f32 %v1563_v26, %v1544_v23 }
 0x412   : > { %v1583_v32 = vpop.f32.mrf.mxu2  ;;  %v1603_v15 = vpop.f32.mrf.mxu3 }
 0x413   : > { %v1584_v20 = vadd.f32 %v1583_v32, %v1564_v16 }
 0x415   : > { %v4034_v18 = vadd.f32 %v1603_v15, %v1584_v20 }
 0x43d   : > { %v1686_v34 = vpop.f32.mrf.mxu0 }
 0x440   : > { %v1706_v61 = vpop.f32.mrf.mxu1 }
 0x441   : > { %v1707_v62 = vadd.f32 %v1706_v61, %v1686_v34  ;;  %v1726_v63 = vpop.f32.mrf.mxu2 }
 0x443   : > { %v1727_v1 = vadd.f32 %v1726_v63, %v1707_v62 }
 0x444   : > { %v1746_v4 = vpop.f32.mrf.mxu3 }
 0x445   : > { %v1747_v22 = vadd.f32 %v1746_v4, %v1727_v1 }
 0x447   : > { %v1766_v30 = vpop.f32.mrf.mxu0 }
 0x448   : > { %v1767_v19 = vadd.f32 %v1766_v30, %v1747_v22 }
 0x449   : > { %v1786_v25 = vpop.f32.mrf.mxu1 }
 0x44a   : > { %v1787_v6 = vadd.f32 %v1786_v25, %v1767_v19 }
 0x44d   : > { %v1806_v36 = vpop.f32.mrf.mxu2 }
 0x44e   : > { %v1807_v38 = vadd.f32 %v1806_v36, %v1787_v6 }
 0x44f   : > { %v1826_v37 = vpop.f32.mrf.mxu3 }
 0x450   : > { %v1827_v40 = vadd.f32 %v1826_v37, %v1807_v38  ;;  %v1622_v37 = vpop.xlane.xlu0 %1621 }
 0x452   : > { %v1829_v9 = vmax.f32 %v1827_v40, 1e-24 }
 0x454   : > { %2398 = vrsqrt.f32 %v1829_v9  ;;  %vm1836_vm15 = vweird.f32 %v1829_v9 }
 0x455   : > { %2400 = vlog2.f32 %v3700_v44 }
 0x45a   : > { %v2399_v13 = vpop.eup %2398 }
 0x45b   : > { %v1831_v14 = vmul.f32 %v2399_v13, %v1829_v9  ;;  %vm1837_vm14 = vweird.f32 %v2399_v13 }
 0x45c   : > { %vm1838_vm0 = vmor %vm1836_vm15, %vm1837_vm14 }
 0x45d   : > { %v1832_v21 = vmul.f32 %v2399_v13, %v1831_v14 }
 0x45f   : > { %v1833_v35 = vmul.f32 0.5, %v1832_v21 }
 0x461   : > { %v1834_v41 = vsub.f32 1.5, %v1833_v35 }
 0x463   : > { %v1835_v42 = vmul.f32 %v2399_v13, %v1834_v41 }
 0x465   : > { %v1839_v43 = vsel %vm1838_vm0, %v2399_v13, %v1835_v42 }
 0x466   : > { %1842 = vperm.xlu1 %2381, %v1839_v43  }
 0x490   : > { %2033 = vmax.xlane.f32.xlu1 %v2032_v53 }
 0x4d8   : > { %v1843_v54 = vpop.permute.xlu1 %1842 }
 0x4d9   : > { %v1845_v8 = vmul.f32 %v1843_v54, %v3840_v29  ;;  %v1846_v12 = vmul.f32 %v1843_v54, %v3856_v5  ;;  %v1847_v7 = vmul.f32 %v1843_v54, %v3833_v27  ;;  %v1848_v56 = vmul.f32 %v1843_v54, %v3847_v39 }
 0x4da   : > { %v1849_v28 = vmul.f32 %v1843_v54, %v3873_v11  ;;  %v1850_v29 = vmul.f32 %v1843_v54, %v3883_v46  ;;  %v1851_v27 = vmul.f32 %v1843_v54, %v3876_v45  ;;  %v1852_v39 = vmul.f32 %v1843_v54, %v3886_v51  ;;  %v2304_v54 = vld [vmem:[%s2843_s11 + $0x8] sm:$0xff] }
 0x4db   : > { %v1853_v57 = vsub.f32 %v1845_v8, %v3350_v47  ;;  %v1854_v10 = vsub.f32 %v1846_v12, %v3353_v48  ;;  %v1855_v58 = vsub.f32 %v1847_v7, %v3356_v49  ;;  %v1856_v24 = vsub.f32 %v1848_v56, %v3359_v50 }
 0x4dc   : > { %v1857_v47 = vsub.f32 %v1849_v28, %v3374_v59  ;;  %v1858_v48 = vsub.f32 %v1850_v29, %v3377_v60  ;;  %v1859_v49 = vsub.f32 %v1851_v27, %v3382_v31  ;;  %v1860_v50 = vsub.f32 %v1852_v39, %v3385_v33  ;;  %v2401_v59 = vpop.eup %2400 }
 0x4dd   : > { %v1861_v23 = vand.u32 2147483647, %v1853_v57  ;;  %v1862_v26 = vand.u32 2147483647, %v1854_v10  ;;  %v1863_v16 = vand.u32 2147483647, %v1855_v58 }
 0x4de   : > { %v1864_v5 = vand.u32 2147483647, %v1856_v24  ;;  %v1865_v11 = vand.u32 2147483647, %v1857_v47  ;;  %v1866_v32 = vand.u32 2147483647, %v1858_v48 }
 0x4df   : > { %1885 = vmatmul.f32.vlgmr.msra.gmra.mxu0 %v1861_v23  ;;  %1905 = vmatmul.f32.vlgmr.msra.gmra.mxu1 %v1862_v26  ;;  %v1867_v46 = vand.u32 2147483647, %v1859_v49  ;;  %v1868_v20 = vand.u32 2147483647, %v1860_v50  ;;  %v785_v60 = vmul.f32 0.6931472, %v2401_v59 }
 0x4e0   : > { %1925 = vmatmul.f32.vlgmr.msra.gmra.mxu2 %v1863_v16  ;;  %1945 = vmatmul.f32.vlgmr.msra.gmra.mxu3 %v1864_v5  ;;  %v2306_v24 = vld [vmem:[%s2843_s11 + $0x10] sm:$0xff]  ;;  %v1606_v28 = vmul.f32 0.0009765625, %v4034_v18  ;;  %v1218_v5 = vpop.xlane.xlu0 %1217 }
 0x4e1   : > { %v786_v33 = vsub.f32 %v3422_v0, %v785_v60  ;;  %v1219_v47 = vrot.slane %v1218_v5, 4 }
 0x4e2   : > { %v1638_v26 = vmul.f32 %v2304_v54, %v1606_v28 }
 0x4e3   : > { %v803_v62 = vmul.f32 %v3710_v2, %v786_v33  ;;  %v1220_v49 = vadd.f32 %v1219_v47, %v1218_v5 }
 0x4e4   : > { %v1639_v29 = vsel %vm1202_vm10, %v1638_v26, 0.0 }
 0x4e7   : > { %1965 = vmatmul.f32.vlgmr.msrb.gmra.mxu0 %v1865_v11  ;;  %1985 = vmatmul.f32.vlgmr.msrb.gmra.mxu1 %v1866_v32  ;;  %v1221_v32 = vrot.slane %v1220_v49, 2 }
 0x4e8   : > { %2005 = vmatmul.f32.vlgmr.msrb.gmra.mxu2 %v1867_v46  ;;  %2025 = vmatmul.f32.vlgmr.msrb.gmra.mxu3 %v1868_v20 }
 0x4e9   : > { %v1222_v59 = vadd.f32 %v1221_v32, %v1220_v49 }
 0x503   : > { %v2034_v45 = vpop.xlane.xlu1 %2033 }
 0x504   : > { %v2035_v51 = vsub.f32 %v2032_v53, %v2034_v45 }
 0x506   : > { %v2036_v15 = vmul.f32 1.442695, %v2035_v51 }
 0x508   : > { %2402 = vpow2.f32 %v2036_v15 }
 0x509   : > { %2404 = vlog2.f32 %v3704_v55 }
 0x50e   : > { %v2403_v31 = vpop.eup %2402 }
 0x50f   : > { %2038 = vadd.xlane.f32.xlu2 %v2403_v31  ;;  %v2405_v34 = vpop.eup %2404 }
 0x510   : > { %v1194_v61 = vmul.f32 0.6931472, %v2405_v34 }
 0x512   : > { %v1195_v63 = vsub.f32 %v3444_v3, %v1194_v61  ;;  %v1223_v61 = vrot.slane %v1222_v59, 1 }
 0x514   : > { %v1196_v1 = vmul.f32 %v1195_v63, %v3710_v2 }
 0x517   : > { %804 = vadd.xlane.f32.xlu2 %v803_v62 }
 0x51f   : > { %1197 = vadd.xlane.f32.xlu2 %v1196_v1 }
 0x55c   : > { %v1886_v44 = vpop.f32.mrf.mxu0  ;;  %v1906_v4 = vpop.f32.mrf.mxu1 }
 0x55d   : > { %v1907_v30 = vadd.f32 %v1906_v4, %v1886_v44 }
 0x563   : > { %v1926_v22 = vpop.f32.mrf.mxu2  ;;  %v1946_v19 = vpop.f32.mrf.mxu3 }
 0x564   : > { %v1927_v55 = vadd.f32 %v1926_v22, %v1907_v30  ;;  %v1966_v0 = vpop.f32.mrf.mxu0  ;;  %v1986_v40 = vpop.f32.mrf.mxu1  ;;  %v1224_v22 = vadd.f32 %v1223_v61, %v1222_v59 }
 0x566   : > { %v1947_v6 = vadd.f32 %v1946_v19, %v1927_v55 }
 0x568   : > { %v1967_v36 = vadd.f32 %v1966_v0, %v1947_v6 }
 0x56a   : > { %v1987_v13 = vadd.f32 %v1986_v40, %v1967_v36 }
 0x56b   : > { %v2006_v21 = vpop.f32.mrf.mxu2  ;;  %v2026_v52 = vpop.f32.mrf.mxu3 }
 0x56c   : > { %v2007_v42 = vadd.f32 %v2006_v21, %v1987_v13 }
 0x56e   : > { %v2027_v8 = vadd.f32 %v2026_v52, %v2007_v42 }
 0x570   : > { %v2029_v57 = vmul.f32 0.0009765625, %v2027_v8 }
 0x572   : > { %v2061_v23 = vmul.f32 %v2306_v24, %v2029_v57 }
 0x574   : > { %v2062_v16 = vsel %vm1202_vm10, %v2061_v23, 0.0 }
 0x582   : > { %v2039_v25 = vpop.xlane.xlu2 %2038 }
 0x583   : > { %2406 = vlog2.f32 %v2039_v25 }
 0x589   : > { %v2407_v38 = vpop.eup %2406 }
 0x58a   : > { %v2041_v9 = vmul.f32 0.6931472, %v2407_v38  ;;  %v805_v3 = vpop.xlane.xlu2 %804 }
 0x58b   : > { %v1623_v14 = vsub.f32 %v805_v3, %v1622_v37 }
 0x58c   : > { %v2042_v35 = vsub.f32 %v2035_v51, %v2041_v9 }
 0x58d   : > { %v1624_v43 = vmul.f32 0.0703125, %v1623_v14 }
 0x58e   : > { %v2043_v41 = vmul.f32 %v2042_v35, %v3710_v2 }
 0x58f   : > { %v1625_v7 = vmul.f32 %v2304_v54, %v1624_v43 }
 0x590   : > { %2044 = vadd.xlane.f32.xlu1 %v2043_v41 }
 0x591   : > { %v1626_v10 = vsel %vm1202_vm10, %v1625_v7, 0.0 }
 0x592   : > { %v1198_v53 = vpop.xlane.xlu2 %1197 }
 0x593   : > { %v1199_v12 = vsub.f32 %v805_v3, %v1198_v53 }
 0x595   : > { %v1200_v56 = vmul.f32 0.0703125, %v1199_v12 }
 0x597   : > { %v1201_v58 = vmul.f32 %v1200_v56, %v3715_v17 }
 0x598   : > { %1627 = vadd.xlane.f32.xlu1 %v1626_v10 }
 0x599   : > { %v1203_v2 = vsel %vm1202_vm10, %v1201_v58, 0.0 }
 0x59a   : > { %1204 = vadd.xlane.f32.xlu2 %v1203_v2 }
 0x5a0   : > { %2063 = vadd.xlane.f32.xlu1 %v2062_v16 }
 0x5a2   : > { %1640 = vadd.xlane.f32.xlu2 %v1639_v29 }
 0x603   : > { %v2045_v27 = vpop.xlane.xlu1 %2044 }
 0x604   : > { %v2046_v39 = vsub.f32 %v805_v3, %v2045_v27 }
 0x606   : > { %v2047_v17 = vmul.f32 0.0703125, %v2046_v39 }
 0x608   : > { %v2048_v48 = vmul.f32 %v2306_v24, %v2047_v17 }
 0x60a   : > { %v2049_v18 = vsel %vm1202_vm10, %v2048_v48, 0.0 }
 0x60b   : > { %2050 = vadd.xlane.f32.xlu0 %v2049_v18  ;;  %v1628_v50 = vpop.xlane.xlu1 %1627 }
 0x60c   : > { %v1629_v11 = vrot.slane %v1628_v50, 4 }
 0x60d   : > { %v1205_v46 = vpop.xlane.xlu2 %1204 }
 0x60e   : > { %v1630_v20 = vadd.f32 %v1629_v11, %v1628_v50  ;;  %v1206_v45 = vrot.slane %v1205_v46, 4 }
 0x610   : > { %v1631_v51 = vrot.slane %v1630_v20, 2  ;;  %v1207_v15 = vadd.f32 %v1206_v45, %v1205_v46 }
 0x612   : > { %v1208_v60 = vrot.slane %v1207_v15, 2  ;;  %v1632_v31 = vadd.f32 %v1631_v51, %v1630_v20 }
 0x613   : > { %v2064_v0 = vpop.xlane.xlu1 %2063 }
 0x614   : > { %v1209_v33 = vadd.f32 %v1208_v60, %v1207_v15  ;;  %v1633_v1 = vrot.slane %v1632_v31, 1  ;;  %v2065_v36 = vrot.slane %v2064_v0, 4 }
 0x615   : > { %v1641_v34 = vpop.xlane.xlu2 %1640 }
 0x616   : > { %v1642_v62 = vrot.slane %v1641_v34, 4  ;;  %v1210_v63 = vrot.slane %v1209_v33, 1  ;;  %v1634_v55 = vadd.f32 %v1633_v1, %v1632_v31  ;;  %v2066_v38 = vadd.f32 %v2065_v36, %v2064_v0 }
 0x618   : > { %v1643_v44 = vadd.f32 %v1642_v62, %v1641_v34  ;;  %v1211_v4 = vadd.f32 %v1210_v63, %v1209_v33  ;;  %v2067_v37 = vrot.slane %v2066_v38, 2 }
 0x61a   : > { %v1644_v30 = vrot.slane %v1643_v44, 2  ;;  %2317 = vpush %v1211_v4  ;;  %v2068_v13 = vadd.f32 %v2067_v37, %v2066_v38 }
 0x61b   : > { %2319 = vpush %v1224_v22 }
 0x61c   : > { %v1645_v19 = vadd.f32 %v1644_v30, %v1643_v44  ;;  %2321 = vpush %v1634_v55  ;;  %v2069_v35 = vrot.slane %v2068_v13, 1 }
 0x61e   : > { %v1646_v25 = vrot.slane %v1645_v19, 1  ;;  %v2070_v43 = vadd.f32 %v2069_v35, %v2068_v13 }
 0x620   : > { %v1647_v6 = vadd.f32 %v1646_v25, %v1645_v19 }
 0x622   : > { %2323 = vpush %v1647_v6 }
 0x64b   : > { %s2318_s26 = spop %2317 }
 0x64c   : > { %s2320_s18 = spop %2319  ;;  %v1213_v53 = vstv %s2318_s26 }
 0x64d   : > { %s2322_s21 = spop %2321  ;;  %v1226_v54 = vstv %s2320_s18 }
 0x64e   : > { %v1636_v8 = vstv %s2322_s21 }
 0x64f   : > { %v1637_v57 = vadd.f32 %v1636_v8, %v1213_v53 }
 0x653   : > { %s2324_s20 = spop %2323 }
 0x654   : > { %v1649_v52 = vstv %s2324_s20 }
 0x655   : > { %v1650_v12 = vadd.f32 %v1649_v52, %v1226_v54 }
 0x67e   : > { %v2051_v40 = vpop.xlane.xlu0 %2050 }
 0x67f   : > { %v2052_v9 = vrot.slane %v2051_v40, 4 }
 0x681   : > { %v2053_v3 = vadd.f32 %v2052_v9, %v2051_v40 }
 0x683   : > { %v2054_v14 = vrot.slane %v2053_v3, 2 }
 0x685   : > { %v2055_v21 = vadd.f32 %v2054_v14, %v2053_v3 }
 0x687   : > { %v2056_v41 = vrot.slane %v2055_v21, 1 }
 0x689   : > { %v2057_v42 = vadd.f32 %v2056_v41, %v2055_v21 }
 0x68b   : > { %2325 = vpush %v2057_v42 }
 0x68c   : > { %2327 = vpush %v2070_v43 }
 0x6bc   : > { %s2326_s10 = spop %2325 }
 0x6bd   : > { %s2328_s29 = spop %2327  ;;  %v2059_v7 = vstv %s2326_s10 }
 0x6be   : > { %v2072_v56 = vstv %s2328_s29  ;;  %v2060_v58 = vadd.f32 %v2059_v7, %v1637_v57 }
 0x6bf   : > { %v2073_v10 = vadd.f32 %v2072_v56, %v1650_v12 }
 0x6c1   : > { %v2074_v24 = vmul.f32 0.03, %v2073_v10 }
 0x6c3   : > { %v2075_v28 = vadd.f32 %v2074_v24, %v2060_v58 }
 0x6c5   : > { %v2076_v2 = vmul.f32 0.03125, %v2075_v28 }
 0x6c7   : > { %2077 = vst [vmem:[%s574_s16] sm:$0x1] %v2076_v2 }
 0x6c8   : > { %2575 = shalt.err (!%p2572_p0)
}
 0x6c9   : > { %2339 = dma.vmem_to_hbm [thread:$0]  (%p2714_p9), %s2090_s1, 16, %s2092_s15, %s2079_s9  }
 0x6ca PF: > { %p2345_p1 = scmp.ge.s32.totalorder %s2622_s27, 2  ;;  %s2103_s26 = sand.u32 1, %s2610_s24  }
 0x6cb   : > { %s2104_s18 = scalar_lea.sflag [#allocation5], %s2103_s26 }
 0x6cc   : > { %p2342_p2 = pnand %p2345_p1, %p2718_p10 }
 0x6ce   : > { %p2343_p3 = pneg %p2342_p2 }
 0x6d0   : > { %2605 = dma.done.wait (%p2343_p3), %s2104_s18, 16  }
 0x6d1   : > { %2607 = vsyncadd (%p2343_p3), %s2104_s18, 4294967280  ;;  %s4127_s27 = sld [smem:[#allocation19_spill]]  ;;  %s4130_s24 = smov %s2614_s25 }
 0x6d2   : > { %s4128_s21 = sld [smem:[#allocation18_spill]] }
 0x6d3   : > { %s4129_s26 = sld [smem:[#allocation20_spill]] }
 0x6d7   : > { %p26_p4 = scmp.ge.s32.totalorder %s4127_s27, 6  }
 0x6d8   : > { %s4131_s25 = smov %s4128_s21 }
 0x6d9   :  { %28 = sbr.rel (!%p26_p4) target bundleno = 12 (0xc), region = 237 }
 0x6de   :  { %2109 = vsyncpa [#allocation4], 1 }
 0x6df   :  { %2111 = vsyncpa [#allocation4 + $0x1], 1 }
 0x6e0   :  { %2112 = vsyncpa [#allocation7], 1 }
 0x6e1   :  { %2114 = vsyncpa [#allocation7 + $0x1], 1 }
 0x6e2   :  { %2115 = vsyncpa [#allocation11], 1 }
 0x6e3   :  { %2117 = vsyncpa [#allocation11 + $0x1], 1 }
 0x6e4   :  { %2118 = vsyncpa [#allocation5], 1 }
 0x6e5   :  { %2120 = vsyncpa [#allocation5 + $0x1], 1 }

</bundles_post_ra>
